<compile_context>
chip_gen: v6e
topology: v6e:2x2x1
jax: 0.10.0
libtpu: 0.0.40
codegen_flags: <defaults>
</compile_context>

<pallas_src>
import math
from functools import partial

import jax
import jax.numpy as jnp
from jax.experimental import pallas as pl
from jax.experimental.pallas import tpu as pltpu


_VMEM_LIMIT = 64 * 1024 * 1024


# ----------------------------------------------------------------------------- helpers
def _gelu(x):
    # exact (erf) GELU, matching torch.nn.functional.gelu default
    return 0.5 * x * (1.0 + jax.lax.erf(x / jnp.sqrt(2.0).astype(x.dtype)))


def _ln(x, g, b, eps):
    # LayerNorm over the last axis, statistics in f32
    mean = jnp.mean(x, axis=-1, keepdims=True)
    xc = x - mean
    var = jnp.mean(xc * xc, axis=-1, keepdims=True)
    return xc * jax.lax.rsqrt(var + eps) * g + b


def _rep1(shape):
    nd = len(shape)
    return pl.BlockSpec(shape, lambda i, _nd=nd: (0,) * _nd)


def _rep3(shape):
    nd = len(shape)
    return pl.BlockSpec(shape, lambda b, q, k, _nd=nd: (0,) * _nd)


def _pick_tile(n, target, align):
    """Largest tile <= target that divides n and is a multiple of `align`.
    Falls back to the full extent (always a legal block size)."""
    if n <= target or n % align != 0:
        return n
    for t in range(min(target, n), align - 1, -1):
        if n % t == 0 and t % align == 0:
            return t
    return n


# ----------------------------------------------------------------------------- kernels
def _conv_gelu_ln_kernel(xp_ref, w_ref, b_ref, g_ref, bt_ref, o_ref, *, eps, kernel_size):
    # xp_ref: (1, N+2p, C) bf16   w_ref: (K, C, C) bf16   b/g/bt: (1, C) f32
    n = o_ref.shape[1]
    c = o_ref.shape[2]
    acc = jnp.zeros((n, c), jnp.float32)
    for kk in range(kernel_size):                      # K taps, statically unrolled
        # slice the *ref* per tap (load handles the sublane offset)
        acc = acc + jnp.dot(xp_ref[0, kk:kk + n, :], w_ref[kk],
                            preferred_element_type=jnp.float32)
    h = _gelu(acc + b_ref[...])
    o_ref[0] = _ln(h, g_ref[...], bt_ref[...], eps).astype(o_ref.dtype)   # fused LN0


def _attn_ln_kernel(*refs, num_heads, eps, has_mask):
    if has_mask:
        (xq_ref, xkv_ref, mask_ref, wq_ref, bq_ref, wk_ref, bk_ref, wv_ref, bv_ref,
         wo_ref, bo_ref, g_ref, bt_ref, o_ref,
         q_s, k_s, v_s, m_s, l_s, acc_s, ctx_s) = refs
    else:
        (xq_ref, xkv_ref, wq_ref, bq_ref, wk_ref, bk_ref, wv_ref, bv_ref,
         wo_ref, bo_ref, g_ref, bt_ref, o_ref,
         q_s, k_s, v_s, m_s, l_s, acc_s, ctx_s) = refs
        mask_ref = None

    ki = pl.program_id(2)
    nk = pl.num_programs(2)
    H = num_heads
    dh = q_s.shape[2]

    # ---- init (first kv tile): head-major Q projection + online-softmax state
    @pl.when(ki == 0)
    def _():
        xq = xq_ref[0]                                  # (tq, C) bf16
        for h in range(H):
            # softmax scale is pre-folded into wq / bq
            qh = jnp.dot(xq, wq_ref[h], preferred_element_type=jnp.float32) + bq_ref[h]
            q_s[h] = qh.astype(jnp.bfloat16)
        m_s[...] = jnp.full(m_s.shape, -1e30, jnp.float32)
        l_s[...] = jnp.zeros(l_s.shape, jnp.float32)
        acc_s[...] = jnp.zeros(acc_s.shape, jnp.float32)

    # ---- per kv tile: head-major K/V projection + online softmax update
    xkv = xkv_ref[0]                                    # (tkv, C) bf16
    for h in range(H):
        kh = jnp.dot(xkv, wk_ref[h], preferred_element_type=jnp.float32) + bk_ref[h]
        vh = jnp.dot(xkv, wv_ref[h], preferred_element_type=jnp.float32) + bv_ref[h]
        k_s[h] = kh.astype(jnp.bfloat16)
        v_s[h] = vh.astype(jnp.bfloat16)

    s = jnp.einsum('hqd,hkd->hqk', q_s[...], k_s[...],
                   preferred_element_type=jnp.float32)  # (H, tq, tkv) f32
    if has_mask:
        s = s + mask_ref[0][None, :, :]

    m_prev = m_s[...]
    m_new = jnp.maximum(m_prev, jnp.max(s, axis=-1, keepdims=True))
    alpha = jnp.exp(m_prev - m_new)
    p = jnp.exp(s - m_new)
    l_s[...] = alpha * l_s[...] + jnp.sum(p, axis=-1, keepdims=True)
    acc_s[...] = alpha * acc_s[...] + jnp.einsum(
        'hqk,hkd->hqd', p.astype(jnp.bfloat16), v_s[...],
        preferred_element_type=jnp.float32)
    m_s[...] = m_new

    # ---- finalize (last kv tile): Wo projection + residual + LN1
    @pl.when(ki == nk - 1)
    def _():
        ctx = acc_s[...] * pl.reciprocal(l_s[...], approx=True)   # (H, tq, dh) f32
        for h in range(H):
            ctx_s[:, h * dh:(h + 1) * dh] = ctx[h].astype(jnp.bfloat16)
        attn = jnp.dot(ctx_s[...], wo_ref[...],
                       preferred_element_type=jnp.float32) + bo_ref[...]
        x32 = xq_ref[0].astype(jnp.float32)
        o_ref[0] = _ln(x32 + attn, g_ref[...], bt_ref[...], eps).astype(o_ref.dtype)


def _ffn_ln_kernel(x_ref, w1_ref, b1_ref, w2_ref, b2_ref, g_ref, bt_ref, o_ref,
                   acc_ref, *, eps):
    fi = pl.program_id(2)
    nf = pl.num_programs(2)

    @pl.when(fi == 0)
    def _():
        acc_ref[...] = jnp.zeros(acc_ref.shape, jnp.float32)

    x = x_ref[0]                                        # (tq, C) bf16
    h = jnp.dot(x, w1_ref[...], preferred_element_type=jnp.float32) + b1_ref[...]
    h = _gelu(h)
    acc_ref[...] += jnp.dot(h.astype(jnp.bfloat16), w2_ref[...],
                            preferred_element_type=jnp.float32)

    @pl.when(fi == nf - 1)
    def _():
        y = acc_ref[...] + b2_ref[...]
        o_ref[0] = _ln(x.astype(jnp.float32) + y, g_ref[...], bt_ref[...],
                       eps).astype(o_ref.dtype)


# ----------------------------------------------------------------------------- wrappers
def conv_gelu_ln(x, conv_w, conv_b, ln_g, ln_b, kernel_size, eps):
    # conv_w: (K, C_in, C_out) bf16 (torch (C_out, C_in, K) pre-transposed,
    # weight_norm folded).  SamePad behavior (trim last sample for even K) is
    # reproduced by keeping exactly the first N shifted-window outputs.
    B, N, C = x.shape
    pad = kernel_size // 2
    xp = jnp.pad(x.astype(jnp.bfloat16), ((0, 0), (pad, pad), (0, 0)))
    Np = N + 2 * pad
    return pl.pallas_call(
        partial(_conv_gelu_ln_kernel, eps=eps, kernel_size=kernel_size),
        out_shape=jax.ShapeDtypeStruct((B, N, C), jnp.bfloat16),
        grid=(B,),
        in_specs=[
            pl.BlockSpec((1, Np, C), lambda i: (i, 0, 0)),
            _rep1(conv_w.shape), _rep1(conv_b.shape),
            _rep1(ln_g.shape), _rep1(ln_b.shape),
        ],
        out_specs=pl.BlockSpec((1, N, C), lambda i: (i, 0, 0)),
        compiler_params=pltpu.CompilerParams(
            dimension_semantics=("parallel",), vmem_limit_bytes=_VMEM_LIMIT),
    )(xp, conv_w, conv_b, ln_g, ln_b)


def attn_block(x, mask, lp, num_heads, eps, *, tq_target=256, tkv_target=512):
    B, N, C = x.shape
    dh = C // num_heads
    has_mask = mask is not None

    tq = _pick_tile(N, tq_target, 8)
    tkv = _pick_tile(N, tkv_target, 128 if has_mask else 8)
    nq, nkv = N // tq, N // tkv

    args = [x, x]
    in_specs = [
        pl.BlockSpec((1, tq, C), lambda b, qi, ki: (b, qi, 0)),   # x -> Q / residual
        pl.BlockSpec((1, tkv, C), lambda b, qi, ki: (b, ki, 0)),  # x -> K / V
    ]
    if has_mask:
        args.append(mask.astype(jnp.float32))
        in_specs.append(pl.BlockSpec((1, tq, tkv), lambda b, qi, ki: (b, qi, ki)))

    w_args = [lp["wq"], lp["bq"], lp["wk"], lp["bk"], lp["wv"], lp["bv"],
              lp["wo"], lp["bo"], lp["ln1_g"], lp["ln1_b"]]
    args += w_args
    in_specs += [_rep3(a.shape) for a in w_args]

    return pl.pallas_call(
        partial(_attn_ln_kernel, num_heads=num_heads, eps=eps, has_mask=has_mask),
        out_shape=jax.ShapeDtypeStruct((B, N, C), jnp.bfloat16),
        grid=(B, nq, nkv),
        in_specs=in_specs,
        out_specs=pl.BlockSpec((1, tq, C), lambda b, qi, ki: (b, qi, 0)),
        scratch_shapes=[
            pltpu.VMEM((num_heads, tq, dh), jnp.bfloat16),   # q (head-major)
            pltpu.VMEM((num_heads, tkv, dh), jnp.bfloat16),  # k
            pltpu.VMEM((num_heads, tkv, dh), jnp.bfloat16),  # v
            pltpu.VMEM((num_heads, tq, 1), jnp.float32),     # m (online softmax)
            pltpu.VMEM((num_heads, tq, 1), jnp.float32),     # l
            pltpu.VMEM((num_heads, tq, dh), jnp.float32),    # acc
            pltpu.VMEM((tq, C), jnp.bfloat16),               # lane-contiguous context
        ],
        compiler_params=pltpu.CompilerParams(
            dimension_semantics=("parallel", "parallel", "arbitrary"),
            vmem_limit_bytes=_VMEM_LIMIT),
    )(*args)


def ffn_block(x, lp, eps, *, tq_target=256, tf_target=512):
    B, N, C = x.shape
    F = lp["w1"].shape[1]
    tq = _pick_tile(N, tq_target, 8)
    tf = _pick_tile(F, tf_target, 128)
    nq, nf = N // tq, F // tf

    return pl.pallas_call(
        partial(_ffn_ln_kernel, eps=eps),
        out_shape=jax.ShapeDtypeStruct((B, N, C), jnp.bfloat16),
        grid=(B, nq, nf),
        in_specs=[
            pl.BlockSpec((1, tq, C), lambda b, qi, fi: (b, qi, 0)),
            pl.BlockSpec((C, tf), lambda b, qi, fi: (0, fi)),     # w1 tiled over F
            pl.BlockSpec((1, tf), lambda b, qi, fi: (0, fi)),     # b1 tiled over F
            pl.BlockSpec((tf, C), lambda b, qi, fi: (fi, 0)),     # w2 tiled over F
            _rep3(lp["b2"].shape), _rep3(lp["ln2_g"].shape), _rep3(lp["ln2_b"].shape),
        ],
        out_specs=pl.BlockSpec((1, tq, C), lambda b, qi, fi: (b, qi, 0)),
        scratch_shapes=[pltpu.VMEM((tq, C), jnp.float32)],        # F-axis accumulator
        compiler_params=pltpu.CompilerParams(
            dimension_semantics=("parallel", "parallel", "arbitrary"),
            vmem_limit_bytes=_VMEM_LIMIT),
    )(x, lp["w1"], lp["b1"], lp["w2"], lp["b2"], lp["ln2_g"], lp["ln2_b"])


def transformer_forward(x, params, *, num_heads, kernel_size, eps=1e-5, mask=None):
    # post_embed: pos_conv_embed (conv + gelu) + layer_norm, fused into one kernel
    x = conv_gelu_ln(x, params["conv_w"], params["conv_b"],
                     params["ln0_g"], params["ln0_b"], kernel_size, eps)
    for lp in params["layers"]:
        x = attn_block(x, mask, lp, num_heads, eps)   # flash MHA + residual + LN1
        x = ffn_block(x, lp, eps)                     # F-tiled FFN + residual + LN2
    # activations are carried in bf16 between kernels; return f32 for interface parity
    return x.astype(jnp.float32)


# ----------------------------------------------------------------------------- params
def init_params(key, *, embed_dim, num_heads, ff_hidden_dim, num_layers, kernel_size):
    C, F, H = embed_dim, ff_hidden_dim, num_heads
    assert C % H == 0
    dh = C // H
    sm_scale = 1.0 / math.sqrt(dh)
    ks = jax.random.split(key, 2 + num_layers)
    scale = 0.02

    def nrm(k, shape):
        return scale * jax.random.normal(k, shape, jnp.float32)

    def head_major(w):        # (C_in, C_out) -> (H, C_in, dh)
        return w.reshape(C, H, dh).transpose(1, 0, 2)

    params = {
        # torch Conv1d weight (C_out, C_in, K) with weight_norm folded, stored
        # pre-transposed as (K, C_in, C_out), bf16 for the MXU (groups=1).
        "conv_w": nrm(ks[0], (kernel_size, C, C)).astype(jnp.bfloat16),
        "conv_b": nrm(ks[1], (1, C)),
        "ln0_g": jnp.ones((1, C), jnp.float32),
        "ln0_b": jnp.zeros((1, C), jnp.float32),
        "layers": [],
    }
    for li in range(num_layers):
        lk = jax.random.split(ks[2 + li], 12)
        wq = head_major(nrm(lk[0], (C, C))) * sm_scale        # scale folded into Q
        bq = nrm(lk[1], (C,)).reshape(H, dh)[:, None, :] * sm_scale
        wk = head_major(nrm(lk[2], (C, C)))
        bk = nrm(lk[3], (C,)).reshape(H, dh)[:, None, :]
        wv = head_major(nrm(lk[4], (C, C)))
        bv = nrm(lk[5], (C,)).reshape(H, dh)[:, None, :]
        lp = {
            "wq": wq.astype(jnp.bfloat16), "bq": bq,
            "wk": wk.astype(jnp.bfloat16), "bk": bk,
            "wv": wv.astype(jnp.bfloat16), "bv": bv,
            # output projection: rows ordered (head, dh) -> matches ctx_s layout
            "wo": nrm(lk[6], (C, C)).astype(jnp.bfloat16), "bo": nrm(lk[7], (1, C)),
            "ln1_g": jnp.ones((1, C), jnp.float32), "ln1_b": jnp.zeros((1, C), jnp.float32),
            "w1": nrm(lk[8], (C, F)).astype(jnp.bfloat16), "b1": nrm(lk[9], (1, F)),
            "w2": nrm(lk[10], (F, C)).astype(jnp.bfloat16), "b2": nrm(lk[11], (1, C)),
            "ln2_g": jnp.ones((1, C), jnp.float32), "ln2_b": jnp.zeros((1, C), jnp.float32),
        }
        params["layers"].append(lp)
    return params


# ----------------------------------------------------------------------------- main
if __name__ == "__main__":
    B, N, C = 2, 8, 32        # batch, sequence, hidden (embed_dim)
    num_heads = 4
    ff_hidden_dim = 64
    num_layers = 2
    kernel_size = 3           # ConvolutionalPositionalEmbedding default

    key = jax.random.PRNGKey(0)
    k_x, k_p = jax.random.split(key)
    x = jax.random.normal(k_x, (B, N, C), jnp.float32)
    params = init_params(k_p, embed_dim=C, num_heads=num_heads,
                         ff_hidden_dim=ff_hidden_dim, num_layers=num_layers,
                         kernel_size=kernel_size)

    fwd = jax.jit(partial(transformer_forward, num_heads=num_heads,
                          kernel_size=kernel_size, eps=1e-5))
    out = fwd(x, params)      # mask=None -> no mask tensor materialized / DMA'd
    out = jax.block_until_ready(out)
    assert out.shape == (B, N, C) and bool(jnp.all(jnp.isfinite(out)))
    print("KERNEL_OK")
</pallas_src>

<mosaic_0001>
module attributes {stable_mosaic.version = 11 : i64} {
  func.func @_conv_gelu_ln_kernel(%arg0: i32, %arg1: memref<1x10x32xbf16, #tpu.memory_space<vmem>>, %arg2: memref<3x32x32xbf16, #tpu.memory_space<vmem>>, %arg3: memref<1x32xf32, #tpu.memory_space<vmem>>, %arg4: memref<1x32xf32, #tpu.memory_space<vmem>>, %arg5: memref<1x32xf32, #tpu.memory_space<vmem>>, %arg6: memref<1x8x32xbf16, #tpu.memory_space<vmem>>) attributes {dimension_semantics = [#tpu.dimension_semantics<parallel>], iteration_bounds = array<i64: 2>, scalar_prefetch = 0 : i64, scratch_operands = 0 : i64, tpu.core_type = #tpu.core_type<tc>, window_params = [{transform_indices = @transform_0, window_bounds = array<i64: 1, 10, 32>}, {pipeline_mode = #tpu.pipeline_mode<synchronous>, transform_indices = @transform_1, window_bounds = array<i64: 3, 32, 32>}, {pipeline_mode = #tpu.pipeline_mode<synchronous>, transform_indices = @transform_2, window_bounds = array<i64: 1, 32>}, {pipeline_mode = #tpu.pipeline_mode<synchronous>, transform_indices = @transform_3, window_bounds = array<i64: 1, 32>}, {pipeline_mode = #tpu.pipeline_mode<synchronous>, transform_indices = @transform_4, window_bounds = array<i64: 1, 32>}, {transform_indices = @transform_5, window_bounds = array<i64: 1, 8, 32>}]} {
    %cst = arith.constant 0.000000e+00 : f32
    %0 = vector.broadcast %cst : f32 to vector<8x32xf32>
    %c0 = arith.constant 0 : index
    %c0_0 = arith.constant 0 : index
    %c0_1 = arith.constant 0 : index
    %1 = vector.load %arg1[%c0, %c0_0, %c0_1] : memref<1x10x32xbf16, #tpu.memory_space<vmem>>, vector<1x8x32xbf16>
    %2 = vector.shape_cast %1 : vector<1x8x32xbf16> to vector<8x32xbf16>
    %c0_2 = arith.constant 0 : index
    %c0_3 = arith.constant 0 : index
    %c0_4 = arith.constant 0 : index
    %3 = vector.load %arg2[%c0_2, %c0_3, %c0_4] : memref<3x32x32xbf16, #tpu.memory_space<vmem>>, vector<1x32x32xbf16>
    %4 = vector.shape_cast %3 : vector<1x32x32xbf16> to vector<32x32xbf16>
    %cst_5 = arith.constant dense<0.000000e+00> : vector<8x32xf32>
    %5 = tpu.matmul %2, %4, %cst_5 {dimension_numbers = #tpu.dot_dimension_numbers<[1], [0], [0], [1], [0, 0, 1, 1], [], []>} : vector<8x32xbf16>, vector<32x32xbf16>, vector<8x32xf32> -> vector<8x32xf32>
    %6 = arith.addf %0, %5 : vector<8x32xf32>
    %c0_6 = arith.constant 0 : index
    %c1 = arith.constant 1 : index
    %c0_7 = arith.constant 0 : index
    %7 = vector.load %arg1[%c0_6, %c1, %c0_7] : memref<1x10x32xbf16, #tpu.memory_space<vmem>>, vector<1x8x32xbf16>
    %8 = vector.shape_cast %7 : vector<1x8x32xbf16> to vector<8x32xbf16>
    %c1_8 = arith.constant 1 : index
    %c0_9 = arith.constant 0 : index
    %c0_10 = arith.constant 0 : index
    %9 = vector.load %arg2[%c1_8, %c0_9, %c0_10] : memref<3x32x32xbf16, #tpu.memory_space<vmem>>, vector<1x32x32xbf16>
    %10 = vector.shape_cast %9 : vector<1x32x32xbf16> to vector<32x32xbf16>
    %cst_11 = arith.constant dense<0.000000e+00> : vector<8x32xf32>
    %11 = tpu.matmul %8, %10, %cst_11 {dimension_numbers = #tpu.dot_dimension_numbers<[1], [0], [0], [1], [0, 0, 1, 1], [], []>} : vector<8x32xbf16>, vector<32x32xbf16>, vector<8x32xf32> -> vector<8x32xf32>
    %12 = arith.addf %6, %11 : vector<8x32xf32>
    %c0_12 = arith.constant 0 : index
    %c2 = arith.constant 2 : index
    %c0_13 = arith.constant 0 : index
    %13 = vector.load %arg1[%c0_12, %c2, %c0_13] : memref<1x10x32xbf16, #tpu.memory_space<vmem>>, vector<1x8x32xbf16>
    %14 = vector.shape_cast %13 : vector<1x8x32xbf16> to vector<8x32xbf16>
    %c2_14 = arith.constant 2 : index
    %c0_15 = arith.constant 0 : index
    %c0_16 = arith.constant 0 : index
    %15 = vector.load %arg2[%c2_14, %c0_15, %c0_16] : memref<3x32x32xbf16, #tpu.memory_space<vmem>>, vector<1x32x32xbf16>
    %16 = vector.shape_cast %15 : vector<1x32x32xbf16> to vector<32x32xbf16>
    %cst_17 = arith.constant dense<0.000000e+00> : vector<8x32xf32>
    %17 = tpu.matmul %14, %16, %cst_17 {dimension_numbers = #tpu.dot_dimension_numbers<[1], [0], [0], [1], [0, 0, 1, 1], [], []>} : vector<8x32xbf16>, vector<32x32xbf16>, vector<8x32xf32> -> vector<8x32xf32>
    %18 = arith.addf %12, %17 : vector<8x32xf32>
    %c0_18 = arith.constant 0 : index
    %c0_19 = arith.constant 0 : index
    %19 = vector.load %arg3[%c0_18, %c0_19] : memref<1x32xf32, #tpu.memory_space<vmem>>, vector<1x32xf32>
    %20 = vector.broadcast %19 : vector<1x32xf32> to vector<8x32xf32>
    %21 = arith.addf %18, %20 : vector<8x32xf32>
    %cst_20 = arith.constant 5.000000e-01 : f32
    %22 = vector.broadcast %cst_20 : f32 to vector<8x32xf32>
    %23 = arith.mulf %22, %21 : vector<8x32xf32>
    %cst_21 = arith.constant 2.000000e+00 : f32
    %24 = math.sqrt %cst_21 : f32
    %25 = vector.broadcast %24 : f32 to vector<8x32xf32>
    %26 = arith.divf %21, %25 : vector<8x32xf32>
    %27 = math.erf %26 : vector<8x32xf32>
    %cst_22 = arith.constant 1.000000e+00 : f32
    %28 = vector.broadcast %cst_22 : f32 to vector<8x32xf32>
    %29 = arith.addf %28, %27 : vector<8x32xf32>
    %30 = arith.mulf %23, %29 : vector<8x32xf32>
    %c0_23 = arith.constant 0 : index
    %c0_24 = arith.constant 0 : index
    %31 = vector.load %arg4[%c0_23, %c0_24] : memref<1x32xf32, #tpu.memory_space<vmem>>, vector<1x32xf32>
    %c0_25 = arith.constant 0 : index
    %c0_26 = arith.constant 0 : index
    %32 = vector.load %arg5[%c0_25, %c0_26] : memref<1x32xf32, #tpu.memory_space<vmem>>, vector<1x32xf32>
    %cst_27 = arith.constant dense<0.000000e+00> : vector<8xf32>
    %33 = vector.multi_reduction <add>, %30, %cst_27 [1] : vector<8x32xf32> to vector<8xf32>
    %34 = vector.shape_cast %33 : vector<8xf32> to vector<8x1xf32>
    %cst_28 = arith.constant 3.200000e+01 : f32
    %35 = vector.broadcast %cst_28 : f32 to vector<8x1xf32>
    %36 = arith.divf %34, %35 : vector<8x1xf32>
    %37 = vector.broadcast %36 : vector<8x1xf32> to vector<8x32xf32>
    %38 = arith.subf %30, %37 : vector<8x32xf32>
    %39 = arith.mulf %38, %38 : vector<8x32xf32>
    %cst_29 = arith.constant dense<0.000000e+00> : vector<8xf32>
    %40 = vector.multi_reduction <add>, %39, %cst_29 [1] : vector<8x32xf32> to vector<8xf32>
    %41 = vector.shape_cast %40 : vector<8xf32> to vector<8x1xf32>
    %cst_30 = arith.constant 3.200000e+01 : f32
    %42 = vector.broadcast %cst_30 : f32 to vector<8x1xf32>
    %43 = arith.divf %41, %42 : vector<8x1xf32>
    %cst_31 = arith.constant 9.99999974E-6 : f32
    %44 = vector.broadcast %cst_31 : f32 to vector<8x1xf32>
    %45 = arith.addf %43, %44 : vector<8x1xf32>
    %46 = math.rsqrt %45 : vector<8x1xf32>
    %47 = vector.broadcast %46 : vector<8x1xf32> to vector<8x32xf32>
    %48 = arith.mulf %38, %47 : vector<8x32xf32>
    %49 = vector.broadcast %31 : vector<1x32xf32> to vector<8x32xf32>
    %50 = arith.mulf %48, %49 : vector<8x32xf32>
    %51 = vector.broadcast %32 : vector<1x32xf32> to vector<8x32xf32>
    %52 = arith.addf %50, %51 : vector<8x32xf32>
    %53 = arith.truncf %52 : vector<8x32xf32> to vector<8x32xbf16>
    %c0_32 = arith.constant 0 : index
    %c0_33 = arith.constant 0 : index
    %c0_34 = arith.constant 0 : index
    %54 = vector.load %arg6[%c0_32, %c0_33, %c0_34] : memref<1x8x32xbf16, #tpu.memory_space<vmem>>, vector<1x8x32xbf16>
    %55 = vector.shape_cast %54 : vector<1x8x32xbf16> to vector<8x32xbf16>
    %56 = vector.shape_cast %53 : vector<8x32xbf16> to vector<1x8x32xbf16>
    tpu.vector_store %arg6[%c0_32, %c0_33, %c0_34], %56 {strides = array<i32>} : memref<1x8x32xbf16, #tpu.memory_space<vmem>>, vector<1x8x32xbf16>,
    return
  }
  func.func @transform_0(%arg0: i32) -> (i32, i32, i32) {
    %c0_i32 = arith.constant 0 : i32
    %c0_i32_0 = arith.constant 0 : i32
    %c0_i32_1 = arith.constant 0 : i32
    return %arg0, %c0_i32, %c0_i32_0 : i32, i32, i32
  }
  func.func @transform_1(%arg0: i32) -> (i32, i32, i32) {
    %c0_i32 = arith.constant 0 : i32
    %c0_i32_0 = arith.constant 0 : i32
    %c0_i32_1 = arith.constant 0 : i32
    %c0_i32_2 = arith.constant 0 : i32
    return %c0_i32, %c0_i32_0, %c0_i32_1 : i32, i32, i32
  }
  func.func @transform_2(%arg0: i32) -> (i32, i32) {
    %c0_i32 = arith.constant 0 : i32
    %c0_i32_0 = arith.constant 0 : i32
    %c0_i32_1 = arith.constant 0 : i32
    return %c0_i32, %c0_i32_0 : i32, i32
  }
  func.func @transform_3(%arg0: i32) -> (i32, i32) {
    %c0_i32 = arith.constant 0 : i32
    %c0_i32_0 = arith.constant 0 : i32
    %c0_i32_1 = arith.constant 0 : i32
    return %c0_i32, %c0_i32_0 : i32, i32
  }
  func.func @transform_4(%arg0: i32) -> (i32, i32) {
    %c0_i32 = arith.constant 0 : i32
    %c0_i32_0 = arith.constant 0 : i32
    %c0_i32_1 = arith.constant 0 : i32
    return %c0_i32, %c0_i32_0 : i32, i32
  }
  func.func @transform_5(%arg0: i32) -> (i32, i32, i32) {
    %c0_i32 = arith.constant 0 : i32
    %c0_i32_0 = arith.constant 0 : i32
    %c0_i32_1 = arith.constant 0 : i32
    return %arg0, %c0_i32, %c0_i32_0 : i32, i32, i32
  }
}

module attributes {stable_mosaic.version = 11 : i64} {
  func.func @_attn_ln_kernel(%arg0: i32, %arg1: i32, %arg2: i32, %arg3: memref<1x8x32xbf16, #tpu.memory_space<vmem>>, %arg4: memref<1x8x32xbf16, #tpu.memory_space<vmem>>, %arg5: memref<4x32x8xbf16, #tpu.memory_space<vmem>>, %arg6: memref<4x1x8xf32, #tpu.memory_space<vmem>>, %arg7: memref<4x32x8xbf16, #tpu.memory_space<vmem>>, %arg8: memref<4x1x8xf32, #tpu.memory_space<vmem>>, %arg9: memref<4x32x8xbf16, #tpu.memory_space<vmem>>, %arg10: memref<4x1x8xf32, #tpu.memory_space<vmem>>, %arg11: memref<32x32xbf16, #tpu.memory_space<vmem>>, %arg12: memref<1x32xf32, #tpu.memory_space<vmem>>, %arg13: memref<1x32xf32, #tpu.memory_space<vmem>>, %arg14: memref<1x32xf32, #tpu.memory_space<vmem>>, %arg15: memref<1x8x32xbf16, #tpu.memory_space<vmem>>, %arg16: memref<4x8x8xbf16, #tpu.memory_space<vmem>>, %arg17: memref<4x8x8xbf16, #tpu.memory_space<vmem>>, %arg18: memref<4x8x8xbf16, #tpu.memory_space<vmem>>, %arg19: memref<4x8x1xf32, #tpu.memory_space<vmem>>, %arg20: memref<4x8x1xf32, #tpu.memory_space<vmem>>, %arg21: memref<4x8x8xf32, #tpu.memory_space<vmem>>, %arg22: memref<8x32xbf16, #tpu.memory_space<vmem>>) attributes {dimension_semantics = [#tpu.dimension_semantics<parallel>, #tpu.dimension_semantics<parallel>, #tpu.dimension_semantics<arbitrary>], iteration_bounds = array<i64: 2, 1, 1>, scalar_prefetch = 0 : i64, scratch_operands = 7 : i64, tpu.core_type = #tpu.core_type<tc>, window_params = [{transform_indices = @transform_0, window_bounds = array<i64: 1, 8, 32>}, {transform_indices = @transform_1, window_bounds = array<i64: 1, 8, 32>}, {pipeline_mode = #tpu.pipeline_mode<synchronous>, transform_indices = @transform_2, window_bounds = array<i64: 4, 32, 8>}, {pipeline_mode = #tpu.pipeline_mode<synchronous>, transform_indices = @transform_3, window_bounds = array<i64: 4, 1, 8>}, {pipeline_mode = #tpu.pipeline_mode<synchronous>, transform_indices = @transform_4, window_bounds = array<i64: 4, 32, 8>}, {pipeline_mode = #tpu.pipeline_mode<synchronous>, transform_indices = @transform_5, window_bounds = array<i64: 4, 1, 8>}, {pipeline_mode = #tpu.pipeline_mode<synchronous>, transform_indices = @transform_6, window_bounds = array<i64: 4, 32, 8>}, {pipeline_mode = #tpu.pipeline_mode<synchronous>, transform_indices = @transform_7, window_bounds = array<i64: 4, 1, 8>}, {pipeline_mode = #tpu.pipeline_mode<synchronous>, transform_indices = @transform_8, window_bounds = array<i64: 32, 32>}, {pipeline_mode = #tpu.pipeline_mode<synchronous>, transform_indices = @transform_9, window_bounds = array<i64: 1, 32>}, {pipeline_mode = #tpu.pipeline_mode<synchronous>, transform_indices = @transform_10, window_bounds = array<i64: 1, 32>}, {pipeline_mode = #tpu.pipeline_mode<synchronous>, transform_indices = @transform_11, window_bounds = array<i64: 1, 32>}, {transform_indices = @transform_12, window_bounds = array<i64: 1, 8, 32>}]} {
    %c0_i32 = arith.constant 0 : i32
    %0 = arith.cmpi eq, %arg2, %c0_i32 : i32
    %1 = arith.extui %0 : i1 to i32
    %c0_i32_0 = arith.constant 0 : i32
    %2 = arith.cmpi ne, %1, %c0_i32_0 : i32
    scf.if %2 {
      %c0_112 = arith.constant 0 : index
      %c0_113 = arith.constant 0 : index
      %c0_114 = arith.constant 0 : index
      %123 = vector.load %arg3[%c0_112, %c0_113, %c0_114] : memref<1x8x32xbf16, #tpu.memory_space<vmem>>, vector<1x8x32xbf16>
      %124 = vector.shape_cast %123 : vector<1x8x32xbf16> to vector<8x32xbf16>
      %c0_115 = arith.constant 0 : index
      %c0_116 = arith.constant 0 : index
      %c0_117 = arith.constant 0 : index
      %125 = vector.load %arg5[%c0_115, %c0_116, %c0_117] : memref<4x32x8xbf16, #tpu.memory_space<vmem>>, vector<1x32x8xbf16>
      %126 = vector.shape_cast %125 : vector<1x32x8xbf16> to vector<32x8xbf16>
      %cst_118 = arith.constant dense<0.000000e+00> : vector<8x8xf32>
      %127 = tpu.matmul %124, %126, %cst_118 {dimension_numbers = #tpu.dot_dimension_numbers<[1], [0], [0], [1], [0, 0, 1, 1], [], []>} : vector<8x32xbf16>, vector<32x8xbf16>, vector<8x8xf32> -> vector<8x8xf32>
      %c0_119 = arith.constant 0 : index
      %c0_120 = arith.constant 0 : index
      %c0_121 = arith.constant 0 : index
      %128 = vector.load %arg6[%c0_119, %c0_120, %c0_121] : memref<4x1x8xf32, #tpu.memory_space<vmem>>, vector<1x1x8xf32>
      %129 = vector.shape_cast %128 : vector<1x1x8xf32> to vector<1x8xf32>
      %130 = vector.broadcast %129 : vector<1x8xf32> to vector<8x8xf32>
      %131 = arith.addf %127, %130 : vector<8x8xf32>
      %132 = arith.truncf %131 : vector<8x8xf32> to vector<8x8xbf16>
      %c0_122 = arith.constant 0 : index
      %c0_123 = arith.constant 0 : index
      %c0_124 = arith.constant 0 : index
      %133 = vector.load %arg16[%c0_122, %c0_123, %c0_124] : memref<4x8x8xbf16, #tpu.memory_space<vmem>>, vector<1x8x8xbf16>
      %134 = vector.shape_cast %133 : vector<1x8x8xbf16> to vector<8x8xbf16>
      %135 = vector.shape_cast %132 : vector<8x8xbf16> to vector<1x8x8xbf16>
      tpu.vector_store %arg16[%c0_122, %c0_123, %c0_124], %135 {strides = array<i32>} : memref<4x8x8xbf16, #tpu.memory_space<vmem>>, vector<1x8x8xbf16>,
      %c1_125 = arith.constant 1 : index
      %c0_126 = arith.constant 0 : index
      %c0_127 = arith.constant 0 : index
      %136 = vector.load %arg5[%c1_125, %c0_126, %c0_127] : memref<4x32x8xbf16, #tpu.memory_space<vmem>>, vector<1x32x8xbf16>
      %137 = vector.shape_cast %136 : vector<1x32x8xbf16> to vector<32x8xbf16>
      %cst_128 = arith.constant dense<0.000000e+00> : vector<8x8xf32>
      %138 = tpu.matmul %124, %137, %cst_128 {dimension_numbers = #tpu.dot_dimension_numbers<[1], [0], [0], [1], [0, 0, 1, 1], [], []>} : vector<8x32xbf16>, vector<32x8xbf16>, vector<8x8xf32> -> vector<8x8xf32>
      %c1_129 = arith.constant 1 : index
      %c0_130 = arith.constant 0 : index
      %c0_131 = arith.constant 0 : index
      %139 = vector.load %arg6[%c1_129, %c0_130, %c0_131] : memref<4x1x8xf32, #tpu.memory_space<vmem>>, vector<1x1x8xf32>
      %140 = vector.shape_cast %139 : vector<1x1x8xf32> to vector<1x8xf32>
      %141 = vector.broadcast %140 : vector<1x8xf32> to vector<8x8xf32>
      %142 = arith.addf %138, %141 : vector<8x8xf32>
      %143 = arith.truncf %142 : vector<8x8xf32> to vector<8x8xbf16>
      %c1_132 = arith.constant 1 : index
      %c0_133 = arith.constant 0 : index
      %c0_134 = arith.constant 0 : index
      %144 = vector.load %arg16[%c1_132, %c0_133, %c0_134] : memref<4x8x8xbf16, #tpu.memory_space<vmem>>, vector<1x8x8xbf16>
      %145 = vector.shape_cast %144 : vector<1x8x8xbf16> to vector<8x8xbf16>
      %146 = vector.shape_cast %143 : vector<8x8xbf16> to vector<1x8x8xbf16>
      tpu.vector_store %arg16[%c1_132, %c0_133, %c0_134], %146 {strides = array<i32>} : memref<4x8x8xbf16, #tpu.memory_space<vmem>>, vector<1x8x8xbf16>,
      %c2_135 = arith.constant 2 : index
      %c0_136 = arith.constant 0 : index
      %c0_137 = arith.constant 0 : index
      %147 = vector.load %arg5[%c2_135, %c0_136, %c0_137] : memref<4x32x8xbf16, #tpu.memory_space<vmem>>, vector<1x32x8xbf16>
      %148 = vector.shape_cast %147 : vector<1x32x8xbf16> to vector<32x8xbf16>
      %cst_138 = arith.constant dense<0.000000e+00> : vector<8x8xf32>
      %149 = tpu.matmul %124, %148, %cst_138 {dimension_numbers = #tpu.dot_dimension_numbers<[1], [0], [0], [1], [0, 0, 1, 1], [], []>} : vector<8x32xbf16>, vector<32x8xbf16>, vector<8x8xf32> -> vector<8x8xf32>
      %c2_139 = arith.constant 2 : index
      %c0_140 = arith.constant 0 : index
      %c0_141 = arith.constant 0 : index
      %150 = vector.load %arg6[%c2_139, %c0_140, %c0_141] : memref<4x1x8xf32, #tpu.memory_space<vmem>>, vector<1x1x8xf32>
      %151 = vector.shape_cast %150 : vector<1x1x8xf32> to vector<1x8xf32>
      %152 = vector.broadcast %151 : vector<1x8xf32> to vector<8x8xf32>
      %153 = arith.addf %149, %152 : vector<8x8xf32>
      %154 = arith.truncf %153 : vector<8x8xf32> to vector<8x8xbf16>
      %c2_142 = arith.constant 2 : index
      %c0_143 = arith.constant 0 : index
      %c0_144 = arith.constant 0 : index
      %155 = vector.load %arg16[%c2_142, %c0_143, %c0_144] : memref<4x8x8xbf16, #tpu.memory_space<vmem>>, vector<1x8x8xbf16>
      %156 = vector.shape_cast %155 : vector<1x8x8xbf16> to vector<8x8xbf16>
      %157 = vector.shape_cast %154 : vector<8x8xbf16> to vector<1x8x8xbf16>
      tpu.vector_store %arg16[%c2_142, %c0_143, %c0_144], %157 {strides = array<i32>} : memref<4x8x8xbf16, #tpu.memory_space<vmem>>, vector<1x8x8xbf16>,
      %c3_145 = arith.constant 3 : index
      %c0_146 = arith.constant 0 : index
      %c0_147 = arith.constant 0 : index
      %158 = vector.load %arg5[%c3_145, %c0_146, %c0_147] : memref<4x32x8xbf16, #tpu.memory_space<vmem>>, vector<1x32x8xbf16>
      %159 = vector.shape_cast %158 : vector<1x32x8xbf16> to vector<32x8xbf16>
      %cst_148 = arith.constant dense<0.000000e+00> : vector<8x8xf32>
      %160 = tpu.matmul %124, %159, %cst_148 {dimension_numbers = #tpu.dot_dimension_numbers<[1], [0], [0], [1], [0, 0, 1, 1], [], []>} : vector<8x32xbf16>, vector<32x8xbf16>, vector<8x8xf32> -> vector<8x8xf32>
      %c3_149 = arith.constant 3 : index
      %c0_150 = arith.constant 0 : index
      %c0_151 = arith.constant 0 : index
      %161 = vector.load %arg6[%c3_149, %c0_150, %c0_151] : memref<4x1x8xf32, #tpu.memory_space<vmem>>, vector<1x1x8xf32>
      %162 = vector.shape_cast %161 : vector<1x1x8xf32> to vector<1x8xf32>
      %163 = vector.broadcast %162 : vector<1x8xf32> to vector<8x8xf32>
      %164 = arith.addf %160, %163 : vector<8x8xf32>
      %165 = arith.truncf %164 : vector<8x8xf32> to vector<8x8xbf16>
      %c3_152 = arith.constant 3 : index
      %c0_153 = arith.constant 0 : index
      %c0_154 = arith.constant 0 : index
      %166 = vector.load %arg16[%c3_152, %c0_153, %c0_154] : memref<4x8x8xbf16, #tpu.memory_space<vmem>>, vector<1x8x8xbf16>
      %167 = vector.shape_cast %166 : vector<1x8x8xbf16> to vector<8x8xbf16>
      %168 = vector.shape_cast %165 : vector<8x8xbf16> to vector<1x8x8xbf16>
      tpu.vector_store %arg16[%c3_152, %c0_153, %c0_154], %168 {strides = array<i32>} : memref<4x8x8xbf16, #tpu.memory_space<vmem>>, vector<1x8x8xbf16>,
      %cst_155 = arith.constant -1.000000e+30 : f32
      %169 = vector.broadcast %cst_155 : f32 to vector<4x8x1xf32>
      %c0_156 = arith.constant 0 : index
      %c0_157 = arith.constant 0 : index
      %c0_158 = arith.constant 0 : index
      %170 = vector.load %arg19[%c0_156, %c0_157, %c0_158] : memref<4x8x1xf32, #tpu.memory_space<vmem>>, vector<4x8x1xf32>
      tpu.vector_store %arg19[%c0_156, %c0_157, %c0_158], %169 {strides = array<i32>} : memref<4x8x1xf32, #tpu.memory_space<vmem>>, vector<4x8x1xf32>,
      %cst_159 = arith.constant 0.000000e+00 : f32
      %171 = vector.broadcast %cst_159 : f32 to vector<4x8x1xf32>
      %c0_160 = arith.constant 0 : index
      %c0_161 = arith.constant 0 : index
      %c0_162 = arith.constant 0 : index
      %172 = vector.load %arg20[%c0_160, %c0_161, %c0_162] : memref<4x8x1xf32, #tpu.memory_space<vmem>>, vector<4x8x1xf32>
      tpu.vector_store %arg20[%c0_160, %c0_161, %c0_162], %171 {strides = array<i32>} : memref<4x8x1xf32, #tpu.memory_space<vmem>>, vector<4x8x1xf32>,
      %cst_163 = arith.constant 0.000000e+00 : f32
      %173 = vector.broadcast %cst_163 : f32 to vector<4x8x8xf32>
      %c0_164 = arith.constant 0 : index
      %c0_165 = arith.constant 0 : index
      %c0_166 = arith.constant 0 : index
      %174 = vector.load %arg21[%c0_164, %c0_165, %c0_166] : memref<4x8x8xf32, #tpu.memory_space<vmem>>, vector<4x8x8xf32>
      tpu.vector_store %arg21[%c0_164, %c0_165, %c0_166], %173 {strides = array<i32>} : memref<4x8x8xf32, #tpu.memory_space<vmem>>, vector<4x8x8xf32>,
    } else {
    }
    %c0 = arith.constant 0 : index
    %c0_1 = arith.constant 0 : index
    %c0_2 = arith.constant 0 : index
    %3 = vector.load %arg4[%c0, %c0_1, %c0_2] : memref<1x8x32xbf16, #tpu.memory_space<vmem>>, vector<1x8x32xbf16>
    %4 = vector.shape_cast %3 : vector<1x8x32xbf16> to vector<8x32xbf16>
    %c0_3 = arith.constant 0 : index
    %c0_4 = arith.constant 0 : index
    %c0_5 = arith.constant 0 : index
    %5 = vector.load %arg7[%c0_3, %c0_4, %c0_5] : memref<4x32x8xbf16, #tpu.memory_space<vmem>>, vector<1x32x8xbf16>
    %6 = vector.shape_cast %5 : vector<1x32x8xbf16> to vector<32x8xbf16>
    %cst = arith.constant dense<0.000000e+00> : vector<8x8xf32>
    %7 = tpu.matmul %4, %6, %cst {dimension_numbers = #tpu.dot_dimension_numbers<[1], [0], [0], [1], [0, 0, 1, 1], [], []>} : vector<8x32xbf16>, vector<32x8xbf16>, vector<8x8xf32> -> vector<8x8xf32>
    %c0_6 = arith.constant 0 : index
    %c0_7 = arith.constant 0 : index
    %c0_8 = arith.constant 0 : index
    %8 = vector.load %arg8[%c0_6, %c0_7, %c0_8] : memref<4x1x8xf32, #tpu.memory_space<vmem>>, vector<1x1x8xf32>
    %9 = vector.shape_cast %8 : vector<1x1x8xf32> to vector<1x8xf32>
    %10 = vector.broadcast %9 : vector<1x8xf32> to vector<8x8xf32>
    %11 = arith.addf %7, %10 : vector<8x8xf32>
    %c0_9 = arith.constant 0 : index
    %c0_10 = arith.constant 0 : index
    %c0_11 = arith.constant 0 : index
    %12 = vector.load %arg9[%c0_9, %c0_10, %c0_11] : memref<4x32x8xbf16, #tpu.memory_space<vmem>>, vector<1x32x8xbf16>
    %13 = vector.shape_cast %12 : vector<1x32x8xbf16> to vector<32x8xbf16>
    %cst_12 = arith.constant dense<0.000000e+00> : vector<8x8xf32>
    %14 = tpu.matmul %4, %13, %cst_12 {dimension_numbers = #tpu.dot_dimension_numbers<[1], [0], [0], [1], [0, 0, 1, 1], [], []>} : vector<8x32xbf16>, vector<32x8xbf16>, vector<8x8xf32> -> vector<8x8xf32>
    %c0_13 = arith.constant 0 : index
    %c0_14 = arith.constant 0 : index
    %c0_15 = arith.constant 0 : index
    %15 = vector.load %arg10[%c0_13, %c0_14, %c0_15] : memref<4x1x8xf32, #tpu.memory_space<vmem>>, vector<1x1x8xf32>
    %16 = vector.shape_cast %15 : vector<1x1x8xf32> to vector<1x8xf32>
    %17 = vector.broadcast %16 : vector<1x8xf32> to vector<8x8xf32>
    %18 = arith.addf %14, %17 : vector<8x8xf32>
    %19 = arith.truncf %11 : vector<8x8xf32> to vector<8x8xbf16>
    %c0_16 = arith.constant 0 : index
    %c0_17 = arith.constant 0 : index
    %c0_18 = arith.constant 0 : index
    %20 = vector.load %arg17[%c0_16, %c0_17, %c0_18] : memref<4x8x8xbf16, #tpu.memory_space<vmem>>, vector<1x8x8xbf16>
    %21 = vector.shape_cast %20 : vector<1x8x8xbf16> to vector<8x8xbf16>
    %22 = vector.shape_cast %19 : vector<8x8xbf16> to vector<1x8x8xbf16>
    tpu.vector_store %arg17[%c0_16, %c0_17, %c0_18], %22 {strides = array<i32>} : memref<4x8x8xbf16, #tpu.memory_space<vmem>>, vector<1x8x8xbf16>,
    %23 = arith.truncf %18 : vector<8x8xf32> to vector<8x8xbf16>
    %c0_19 = arith.constant 0 : index
    %c0_20 = arith.constant 0 : index
    %c0_21 = arith.constant 0 : index
    %24 = vector.load %arg18[%c0_19, %c0_20, %c0_21] : memref<4x8x8xbf16, #tpu.memory_space<vmem>>, vector<1x8x8xbf16>
    %25 = vector.shape_cast %24 : vector<1x8x8xbf16> to vector<8x8xbf16>
    %26 = vector.shape_cast %23 : vector<8x8xbf16> to vector<1x8x8xbf16>
    tpu.vector_store %arg18[%c0_19, %c0_20, %c0_21], %26 {strides = array<i32>} : memref<4x8x8xbf16, #tpu.memory_space<vmem>>, vector<1x8x8xbf16>,
    %c1 = arith.constant 1 : index
    %c0_22 = arith.constant 0 : index
    %c0_23 = arith.constant 0 : index
    %27 = vector.load %arg7[%c1, %c0_22, %c0_23] : memref<4x32x8xbf16, #tpu.memory_space<vmem>>, vector<1x32x8xbf16>
    %28 = vector.shape_cast %27 : vector<1x32x8xbf16> to vector<32x8xbf16>
    %cst_24 = arith.constant dense<0.000000e+00> : vector<8x8xf32>
    %29 = tpu.matmul %4, %28, %cst_24 {dimension_numbers = #tpu.dot_dimension_numbers<[1], [0], [0], [1], [0, 0, 1, 1], [], []>} : vector<8x32xbf16>, vector<32x8xbf16>, vector<8x8xf32> -> vector<8x8xf32>
    %c1_25 = arith.constant 1 : index
    %c0_26 = arith.constant 0 : index
    %c0_27 = arith.constant 0 : index
    %30 = vector.load %arg8[%c1_25, %c0_26, %c0_27] : memref<4x1x8xf32, #tpu.memory_space<vmem>>, vector<1x1x8xf32>
    %31 = vector.shape_cast %30 : vector<1x1x8xf32> to vector<1x8xf32>
    %32 = vector.broadcast %31 : vector<1x8xf32> to vector<8x8xf32>
    %33 = arith.addf %29, %32 : vector<8x8xf32>
    %c1_28 = arith.constant 1 : index
    %c0_29 = arith.constant 0 : index
    %c0_30 = arith.constant 0 : index
    %34 = vector.load %arg9[%c1_28, %c0_29, %c0_30] : memref<4x32x8xbf16, #tpu.memory_space<vmem>>, vector<1x32x8xbf16>
    %35 = vector.shape_cast %34 : vector<1x32x8xbf16> to vector<32x8xbf16>
    %cst_31 = arith.constant dense<0.000000e+00> : vector<8x8xf32>
    %36 = tpu.matmul %4, %35, %cst_31 {dimension_numbers = #tpu.dot_dimension_numbers<[1], [0], [0], [1], [0, 0, 1, 1], [], []>} : vector<8x32xbf16>, vector<32x8xbf16>, vector<8x8xf32> -> vector<8x8xf32>
    %c1_32 = arith.constant 1 : index
    %c0_33 = arith.constant 0 : index
    %c0_34 = arith.constant 0 : index
    %37 = vector.load %arg10[%c1_32, %c0_33, %c0_34] : memref<4x1x8xf32, #tpu.memory_space<vmem>>, vector<1x1x8xf32>
    %38 = vector.shape_cast %37 : vector<1x1x8xf32> to vector<1x8xf32>
    %39 = vector.broadcast %38 : vector<1x8xf32> to vector<8x8xf32>
    %40 = arith.addf %36, %39 : vector<8x8xf32>
    %41 = arith.truncf %33 : vector<8x8xf32> to vector<8x8xbf16>
    %c1_35 = arith.constant 1 : index
    %c0_36 = arith.constant 0 : index
    %c0_37 = arith.constant 0 : index
    %42 = vector.load %arg17[%c1_35, %c0_36, %c0_37] : memref<4x8x8xbf16, #tpu.memory_space<vmem>>, vector<1x8x8xbf16>
    %43 = vector.shape_cast %42 : vector<1x8x8xbf16> to vector<8x8xbf16>
    %44 = vector.shape_cast %41 : vector<8x8xbf16> to vector<1x8x8xbf16>
    tpu.vector_store %arg17[%c1_35, %c0_36, %c0_37], %44 {strides = array<i32>} : memref<4x8x8xbf16, #tpu.memory_space<vmem>>, vector<1x8x8xbf16>,
    %45 = arith.truncf %40 : vector<8x8xf32> to vector<8x8xbf16>
    %c1_38 = arith.constant 1 : index
    %c0_39 = arith.constant 0 : index
    %c0_40 = arith.constant 0 : index
    %46 = vector.load %arg18[%c1_38, %c0_39, %c0_40] : memref<4x8x8xbf16, #tpu.memory_space<vmem>>, vector<1x8x8xbf16>
    %47 = vector.shape_cast %46 : vector<1x8x8xbf16> to vector<8x8xbf16>
    %48 = vector.shape_cast %45 : vector<8x8xbf16> to vector<1x8x8xbf16>
    tpu.vector_store %arg18[%c1_38, %c0_39, %c0_40], %48 {strides = array<i32>} : memref<4x8x8xbf16, #tpu.memory_space<vmem>>, vector<1x8x8xbf16>,
    %c2 = arith.constant 2 : index
    %c0_41 = arith.constant 0 : index
    %c0_42 = arith.constant 0 : index
    %49 = vector.load %arg7[%c2, %c0_41, %c0_42] : memref<4x32x8xbf16, #tpu.memory_space<vmem>>, vector<1x32x8xbf16>
    %50 = vector.shape_cast %49 : vector<1x32x8xbf16> to vector<32x8xbf16>
    %cst_43 = arith.constant dense<0.000000e+00> : vector<8x8xf32>
    %51 = tpu.matmul %4, %50, %cst_43 {dimension_numbers = #tpu.dot_dimension_numbers<[1], [0], [0], [1], [0, 0, 1, 1], [], []>} : vector<8x32xbf16>, vector<32x8xbf16>, vector<8x8xf32> -> vector<8x8xf32>
    %c2_44 = arith.constant 2 : index
    %c0_45 = arith.constant 0 : index
    %c0_46 = arith.constant 0 : index
    %52 = vector.load %arg8[%c2_44, %c0_45, %c0_46] : memref<4x1x8xf32, #tpu.memory_space<vmem>>, vector<1x1x8xf32>
    %53 = vector.shape_cast %52 : vector<1x1x8xf32> to vector<1x8xf32>
    %54 = vector.broadcast %53 : vector<1x8xf32> to vector<8x8xf32>
    %55 = arith.addf %51, %54 : vector<8x8xf32>
    %c2_47 = arith.constant 2 : index
    %c0_48 = arith.constant 0 : index
    %c0_49 = arith.constant 0 : index
    %56 = vector.load %arg9[%c2_47, %c0_48, %c0_49] : memref<4x32x8xbf16, #tpu.memory_space<vmem>>, vector<1x32x8xbf16>
    %57 = vector.shape_cast %56 : vector<1x32x8xbf16> to vector<32x8xbf16>
    %cst_50 = arith.constant dense<0.000000e+00> : vector<8x8xf32>
    %58 = tpu.matmul %4, %57, %cst_50 {dimension_numbers = #tpu.dot_dimension_numbers<[1], [0], [0], [1], [0, 0, 1, 1], [], []>} : vector<8x32xbf16>, vector<32x8xbf16>, vector<8x8xf32> -> vector<8x8xf32>
    %c2_51 = arith.constant 2 : index
    %c0_52 = arith.constant 0 : index
    %c0_53 = arith.constant 0 : index
    %59 = vector.load %arg10[%c2_51, %c0_52, %c0_53] : memref<4x1x8xf32, #tpu.memory_space<vmem>>, vector<1x1x8xf32>
    %60 = vector.shape_cast %59 : vector<1x1x8xf32> to vector<1x8xf32>
    %61 = vector.broadcast %60 : vector<1x8xf32> to vector<8x8xf32>
    %62 = arith.addf %58, %61 : vector<8x8xf32>
    %63 = arith.truncf %55 : vector<8x8xf32> to vector<8x8xbf16>
    %c2_54 = arith.constant 2 : index
    %c0_55 = arith.constant 0 : index
    %c0_56 = arith.constant 0 : index
    %64 = vector.load %arg17[%c2_54, %c0_55, %c0_56] : memref<4x8x8xbf16, #tpu.memory_space<vmem>>, vector<1x8x8xbf16>
    %65 = vector.shape_cast %64 : vector<1x8x8xbf16> to vector<8x8xbf16>
    %66 = vector.shape_cast %63 : vector<8x8xbf16> to vector<1x8x8xbf16>
    tpu.vector_store %arg17[%c2_54, %c0_55, %c0_56], %66 {strides = array<i32>} : memref<4x8x8xbf16, #tpu.memory_space<vmem>>, vector<1x8x8xbf16>,
    %67 = arith.truncf %62 : vector<8x8xf32> to vector<8x8xbf16>
    %c2_57 = arith.constant 2 : index
    %c0_58 = arith.constant 0 : index
    %c0_59 = arith.constant 0 : index
    %68 = vector.load %arg18[%c2_57, %c0_58, %c0_59] : memref<4x8x8xbf16, #tpu.memory_space<vmem>>, vector<1x8x8xbf16>
    %69 = vector.shape_cast %68 : vector<1x8x8xbf16> to vector<8x8xbf16>
    %70 = vector.shape_cast %67 : vector<8x8xbf16> to vector<1x8x8xbf16>
    tpu.vector_store %arg18[%c2_57, %c0_58, %c0_59], %70 {strides = array<i32>} : memref<4x8x8xbf16, #tpu.memory_space<vmem>>, vector<1x8x8xbf16>,
    %c3 = arith.constant 3 : index
    %c0_60 = arith.constant 0 : index
    %c0_61 = arith.constant 0 : index
    %71 = vector.load %arg7[%c3, %c0_60, %c0_61] : memref<4x32x8xbf16, #tpu.memory_space<vmem>>, vector<1x32x8xbf16>
    %72 = vector.shape_cast %71 : vector<1x32x8xbf16> to vector<32x8xbf16>
    %cst_62 = arith.constant dense<0.000000e+00> : vector<8x8xf32>
    %73 = tpu.matmul %4, %72, %cst_62 {dimension_numbers = #tpu.dot_dimension_numbers<[1], [0], [0], [1], [0, 0, 1, 1], [], []>} : vector<8x32xbf16>, vector<32x8xbf16>, vector<8x8xf32> -> vector<8x8xf32>
    %c3_63 = arith.constant 3 : index
    %c0_64 = arith.constant 0 : index
    %c0_65 = arith.constant 0 : index
    %74 = vector.load %arg8[%c3_63, %c0_64, %c0_65] : memref<4x1x8xf32, #tpu.memory_space<vmem>>, vector<1x1x8xf32>
    %75 = vector.shape_cast %74 : vector<1x1x8xf32> to vector<1x8xf32>
    %76 = vector.broadcast %75 : vector<1x8xf32> to vector<8x8xf32>
    %77 = arith.addf %73, %76 : vector<8x8xf32>
    %c3_66 = arith.constant 3 : index
    %c0_67 = arith.constant 0 : index
    %c0_68 = arith.constant 0 : index
    %78 = vector.load %arg9[%c3_66, %c0_67, %c0_68] : memref<4x32x8xbf16, #tpu.memory_space<vmem>>, vector<1x32x8xbf16>
    %79 = vector.shape_cast %78 : vector<1x32x8xbf16> to vector<32x8xbf16>
    %cst_69 = arith.constant dense<0.000000e+00> : vector<8x8xf32>
    %80 = tpu.matmul %4, %79, %cst_69 {dimension_numbers = #tpu.dot_dimension_numbers<[1], [0], [0], [1], [0, 0, 1, 1], [], []>} : vector<8x32xbf16>, vector<32x8xbf16>, vector<8x8xf32> -> vector<8x8xf32>
    %c3_70 = arith.constant 3 : index
    %c0_71 = arith.constant 0 : index
    %c0_72 = arith.constant 0 : index
    %81 = vector.load %arg10[%c3_70, %c0_71, %c0_72] : memref<4x1x8xf32, #tpu.memory_space<vmem>>, vector<1x1x8xf32>
    %82 = vector.shape_cast %81 : vector<1x1x8xf32> to vector<1x8xf32>
    %83 = vector.broadcast %82 : vector<1x8xf32> to vector<8x8xf32>
    %84 = arith.addf %80, %83 : vector<8x8xf32>
    %85 = arith.truncf %77 : vector<8x8xf32> to vector<8x8xbf16>
    %c3_73 = arith.constant 3 : index
    %c0_74 = arith.constant 0 : index
    %c0_75 = arith.constant 0 : index
    %86 = vector.load %arg17[%c3_73, %c0_74, %c0_75] : memref<4x8x8xbf16, #tpu.memory_space<vmem>>, vector<1x8x8xbf16>
    %87 = vector.shape_cast %86 : vector<1x8x8xbf16> to vector<8x8xbf16>
    %88 = vector.shape_cast %85 : vector<8x8xbf16> to vector<1x8x8xbf16>
    tpu.vector_store %arg17[%c3_73, %c0_74, %c0_75], %88 {strides = array<i32>} : memref<4x8x8xbf16, #tpu.memory_space<vmem>>, vector<1x8x8xbf16>,
    %89 = arith.truncf %84 : vector<8x8xf32> to vector<8x8xbf16>
    %c3_76 = arith.constant 3 : index
    %c0_77 = arith.constant 0 : index
    %c0_78 = arith.constant 0 : index
    %90 = vector.load %arg18[%c3_76, %c0_77, %c0_78] : memref<4x8x8xbf16, #tpu.memory_space<vmem>>, vector<1x8x8xbf16>
    %91 = vector.shape_cast %90 : vector<1x8x8xbf16> to vector<8x8xbf16>
    %92 = vector.shape_cast %89 : vector<8x8xbf16> to vector<1x8x8xbf16>
    tpu.vector_store %arg18[%c3_76, %c0_77, %c0_78], %92 {strides = array<i32>} : memref<4x8x8xbf16, #tpu.memory_space<vmem>>, vector<1x8x8xbf16>,
    %c0_79 = arith.constant 0 : index
    %c0_80 = arith.constant 0 : index
    %c0_81 = arith.constant 0 : index
    %93 = vector.load %arg16[%c0_79, %c0_80, %c0_81] : memref<4x8x8xbf16, #tpu.memory_space<vmem>>, vector<4x8x8xbf16>
    %c0_82 = arith.constant 0 : index
    %c0_83 = arith.constant 0 : index
    %c0_84 = arith.constant 0 : index
    %94 = vector.load %arg17[%c0_82, %c0_83, %c0_84] : memref<4x8x8xbf16, #tpu.memory_space<vmem>>, vector<4x8x8xbf16>
    "tpu.trace_start"() <{level = 10 : i32, message = "hqd,hkd->hqk"}> : () -> ()
    %cst_85 = arith.constant dense<0.000000e+00> : vector<4x8x8xf32>
    %95 = tpu.matmul %93, %94, %cst_85 {dimension_numbers = #tpu.dot_dimension_numbers<[2], [2], [1], [1], [0, 0, 0, 1, 1, 1], [0], [0]>} : vector<4x8x8xbf16>, vector<4x8x8xbf16>, vector<4x8x8xf32> -> vector<4x8x8xf32>
    "tpu.trace_stop"() : () -> ()
    %c0_86 = arith.constant 0 : index
    %c0_87 = arith.constant 0 : index
    %c0_88 = arith.constant 0 : index
    %96 = vector.load %arg19[%c0_86, %c0_87, %c0_88] : memref<4x8x1xf32, #tpu.memory_space<vmem>>, vector<4x8x1xf32>
    %cst_89 = arith.constant dense<0xFF800000> : vector<4x8xf32>
    %97 = vector.multi_reduction <maximumf>, %95, %cst_89 [2] : vector<4x8x8xf32> to vector<4x8xf32>
    %98 = vector.shape_cast %97 : vector<4x8xf32> to vector<4x8x1xf32>
    %99 = arith.maximumf %96, %98 : vector<4x8x1xf32>
    %100 = arith.subf %96, %99 : vector<4x8x1xf32>
    %101 = math.exp %100 : vector<4x8x1xf32>
    %102 = vector.broadcast %99 : vector<4x8x1xf32> to vector<4x8x8xf32>
    %103 = arith.subf %95, %102 : vector<4x8x8xf32>
    %104 = math.exp %103 : vector<4x8x8xf32>
    %c0_90 = arith.constant 0 : index
    %c0_91 = arith.constant 0 : index
    %c0_92 = arith.constant 0 : index
    %105 = vector.load %arg20[%c0_90, %c0_91, %c0_92] : memref<4x8x1xf32, #tpu.memory_space<vmem>>, vector<4x8x1xf32>
    %106 = arith.mulf %101, %105 : vector<4x8x1xf32>
    %cst_93 = arith.constant dense<0.000000e+00> : vector<4x8xf32>
    %107 = vector.multi_reduction <add>, %104, %cst_93 [2] : vector<4x8x8xf32> to vector<4x8xf32>
    %108 = vector.shape_cast %107 : vector<4x8xf32> to vector<4x8x1xf32>
    %109 = arith.addf %106, %108 : vector<4x8x1xf32>
    %c0_94 = arith.constant 0 : index
    %c0_95 = arith.constant 0 : index
    %c0_96 = arith.constant 0 : index
    %110 = vector.load %arg20[%c0_94, %c0_95, %c0_96] : memref<4x8x1xf32, #tpu.memory_space<vmem>>, vector<4x8x1xf32>
    tpu.vector_store %arg20[%c0_94, %c0_95, %c0_96], %109 {strides = array<i32>} : memref<4x8x1xf32, #tpu.memory_space<vmem>>, vector<4x8x1xf32>,
    %c0_97 = arith.constant 0 : index
    %c0_98 = arith.constant 0 : index
    %c0_99 = arith.constant 0 : index
    %111 = vector.load %arg21[%c0_97, %c0_98, %c0_99] : memref<4x8x8xf32, #tpu.memory_space<vmem>>, vector<4x8x8xf32>
    %112 = vector.broadcast %101 : vector<4x8x1xf32> to vector<4x8x8xf32>
    %113 = arith.mulf %112, %111 : vector<4x8x8xf32>
    %114 = arith.truncf %104 : vector<4x8x8xf32> to vector<4x8x8xbf16>
    %c0_100 = arith.constant 0 : index
    %c0_101 = arith.constant 0 : index
    %c0_102 = arith.constant 0 : index
    %115 = vector.load %arg18[%c0_100, %c0_101, %c0_102] : memref<4x8x8xbf16, #tpu.memory_space<vmem>>, vector<4x8x8xbf16>
    "tpu.trace_start"() <{level = 10 : i32, message = "hqk,hkd->hqd"}> : () -> ()
    %cst_103 = arith.constant dense<0.000000e+00> : vector<4x8x8xf32>
    %116 = tpu.matmul %114, %115, %cst_103 {dimension_numbers = #tpu.dot_dimension_numbers<[2], [1], [1], [2], [0, 0, 0, 1, 1, 2], [0], [0]>} : vector<4x8x8xbf16>, vector<4x8x8xbf16>, vector<4x8x8xf32> -> vector<4x8x8xf32>
    "tpu.trace_stop"() : () -> ()
    %117 = arith.addf %113, %116 : vector<4x8x8xf32>
    %c0_104 = arith.constant 0 : index
    %c0_105 = arith.constant 0 : index
    %c0_106 = arith.constant 0 : index
    %118 = vector.load %arg21[%c0_104, %c0_105, %c0_106] : memref<4x8x8xf32, #tpu.memory_space<vmem>>, vector<4x8x8xf32>
    tpu.vector_store %arg21[%c0_104, %c0_105, %c0_106], %117 {strides = array<i32>} : memref<4x8x8xf32, #tpu.memory_space<vmem>>, vector<4x8x8xf32>,
    %c0_107 = arith.constant 0 : index
    %c0_108 = arith.constant 0 : index
    %c0_109 = arith.constant 0 : index
    %119 = vector.load %arg19[%c0_107, %c0_108, %c0_109] : memref<4x8x1xf32, #tpu.memory_space<vmem>>, vector<4x8x1xf32>
    tpu.vector_store %arg19[%c0_107, %c0_108, %c0_109], %99 {strides = array<i32>} : memref<4x8x1xf32, #tpu.memory_space<vmem>>, vector<4x8x1xf32>,
    %c0_i32_110 = arith.constant 0 : i32
    %120 = arith.cmpi eq, %arg2, %c0_i32_110 : i32
    %121 = arith.extui %120 : i1 to i32
    %c0_i32_111 = arith.constant 0 : i32
    %122 = arith.cmpi ne, %121, %c0_i32_111 : i32
    scf.if %122 {
      %c0_112 = arith.constant 0 : index
      %c0_113 = arith.constant 0 : index
      %c0_114 = arith.constant 0 : index
      %123 = vector.load %arg21[%c0_112, %c0_113, %c0_114] : memref<4x8x8xf32, #tpu.memory_space<vmem>>, vector<4x8x8xf32>
      %c0_115 = arith.constant 0 : index
      %c0_116 = arith.constant 0 : index
      %c0_117 = arith.constant 0 : index
      %124 = vector.load %arg20[%c0_115, %c0_116, %c0_117] : memref<4x8x1xf32, #tpu.memory_space<vmem>>, vector<4x8x1xf32>
      %125 = tpu.reciprocal %124 {approx = true} : vector<4x8x1xf32> -> vector<4x8x1xf32>
      %126 = vector.broadcast %125 : vector<4x8x1xf32> to vector<4x8x8xf32>
      %127 = arith.mulf %123, %126 : vector<4x8x8xf32>
      %128 = vector.extract_strided_slice %127 {offsets = [0, 0, 0], sizes = [1, 8, 8], strides = [1, 1, 1]} : vector<4x8x8xf32> to vector<1x8x8xf32>
      %129 = vector.shape_cast %128 : vector<1x8x8xf32> to vector<8x8xf32>
      %130 = arith.truncf %129 : vector<8x8xf32> to vector<8x8xbf16>
      %c0_118 = arith.constant 0 : index
      %c0_119 = arith.constant 0 : index
      %131 = vector.load %arg22[%c0_118, %c0_119] : memref<8x32xbf16, #tpu.memory_space<vmem>>, vector<8x8xbf16>
      tpu.vector_store %arg22[%c0_118, %c0_119], %130 {strides = array<i32>} : memref<8x32xbf16, #tpu.memory_space<vmem>>, vector<8x8xbf16>,
      %132 = vector.extract_strided_slice %127 {offsets = [1, 0, 0], sizes = [1, 8, 8], strides = [1, 1, 1]} : vector<4x8x8xf32> to vector<1x8x8xf32>
      %133 = vector.shape_cast %132 : vector<1x8x8xf32> to vector<8x8xf32>
      %134 = arith.truncf %133 : vector<8x8xf32> to vector<8x8xbf16>
      %c0_120 = arith.constant 0 : index
      %c8 = arith.constant 8 : index
      %135 = vector.load %arg22[%c0_120, %c8] : memref<8x32xbf16, #tpu.memory_space<vmem>>, vector<8x8xbf16>
      tpu.vector_store %arg22[%c0_120, %c8], %134 {strides = array<i32>} : memref<8x32xbf16, #tpu.memory_space<vmem>>, vector<8x8xbf16>,
      %136 = vector.extract_strided_slice %127 {offsets = [2, 0, 0], sizes = [1, 8, 8], strides = [1, 1, 1]} : vector<4x8x8xf32> to vector<1x8x8xf32>
      %137 = vector.shape_cast %136 : vector<1x8x8xf32> to vector<8x8xf32>
      %138 = arith.truncf %137 : vector<8x8xf32> to vector<8x8xbf16>
      %c0_121 = arith.constant 0 : index
      %c16 = arith.constant 16 : index
      %139 = vector.load %arg22[%c0_121, %c16] : memref<8x32xbf16, #tpu.memory_space<vmem>>, vector<8x8xbf16>
      tpu.vector_store %arg22[%c0_121, %c16], %138 {strides = array<i32>} : memref<8x32xbf16, #tpu.memory_space<vmem>>, vector<8x8xbf16>,
      %140 = vector.extract_strided_slice %127 {offsets = [3, 0, 0], sizes = [1, 8, 8], strides = [1, 1, 1]} : vector<4x8x8xf32> to vector<1x8x8xf32>
      %141 = vector.shape_cast %140 : vector<1x8x8xf32> to vector<8x8xf32>
      %142 = arith.truncf %141 : vector<8x8xf32> to vector<8x8xbf16>
      %c0_122 = arith.constant 0 : index
      %c24 = arith.constant 24 : index
      %143 = vector.load %arg22[%c0_122, %c24] : memref<8x32xbf16, #tpu.memory_space<vmem>>, vector<8x8xbf16>
      tpu.vector_store %arg22[%c0_122, %c24], %142 {strides = array<i32>} : memref<8x32xbf16, #tpu.memory_space<vmem>>, vector<8x8xbf16>,
      %c0_123 = arith.constant 0 : index
      %c0_124 = arith.constant 0 : index
      %144 = vector.load %arg22[%c0_123, %c0_124] : memref<8x32xbf16, #tpu.memory_space<vmem>>, vector<8x32xbf16>
      %c0_125 = arith.constant 0 : index
      %c0_126 = arith.constant 0 : index
      %145 = vector.load %arg11[%c0_125, %c0_126] : memref<32x32xbf16, #tpu.memory_space<vmem>>, vector<32x32xbf16>
      %cst_127 = arith.constant dense<0.000000e+00> : vector<8x32xf32>
      %146 = tpu.matmul %144, %145, %cst_127 {dimension_numbers = #tpu.dot_dimension_numbers<[1], [0], [0], [1], [0, 0, 1, 1], [], []>} : vector<8x32xbf16>, vector<32x32xbf16>, vector<8x32xf32> -> vector<8x32xf32>
      %c0_128 = arith.constant 0 : index
      %c0_129 = arith.constant 0 : index
      %147 = vector.load %arg12[%c0_128, %c0_129] : memref<1x32xf32, #tpu.memory_space<vmem>>, vector<1x32xf32>
      %148 = vector.broadcast %147 : vector<1x32xf32> to vector<8x32xf32>
      %149 = arith.addf %146, %148 : vector<8x32xf32>
      %c0_130 = arith.constant 0 : index
      %c0_131 = arith.constant 0 : index
      %c0_132 = arith.constant 0 : index
      %150 = vector.load %arg3[%c0_130, %c0_131, %c0_132] : memref<1x8x32xbf16, #tpu.memory_space<vmem>>, vector<1x8x32xbf16>
      %151 = vector.shape_cast %150 : vector<1x8x32xbf16> to vector<8x32xbf16>
      %152 = arith.extf %151 : vector<8x32xbf16> to vector<8x32xf32>
      %153 = arith.addf %152, %149 : vector<8x32xf32>
      %c0_133 = arith.constant 0 : index
      %c0_134 = arith.constant 0 : index
      %154 = vector.load %arg13[%c0_133, %c0_134] : memref<1x32xf32, #tpu.memory_space<vmem>>, vector<1x32xf32>
      %c0_135 = arith.constant 0 : index
      %c0_136 = arith.constant 0 : index
      %155 = vector.load %arg14[%c0_135, %c0_136] : memref<1x32xf32, #tpu.memory_space<vmem>>, vector<1x32xf32>
      %cst_137 = arith.constant dense<0.000000e+00> : vector<8xf32>
      %156 = vector.multi_reduction <add>, %153, %cst_137 [1] : vector<8x32xf32> to vector<8xf32>
      %157 = vector.shape_cast %156 : vector<8xf32> to vector<8x1xf32>
      %cst_138 = arith.constant 3.200000e+01 : f32
      %158 = vector.broadcast %cst_138 : f32 to vector<8x1xf32>
      %159 = arith.divf %157, %158 : vector<8x1xf32>
      %160 = vector.broadcast %159 : vector<8x1xf32> to vector<8x32xf32>
      %161 = arith.subf %153, %160 : vector<8x32xf32>
      %162 = arith.mulf %161, %161 : vector<8x32xf32>
      %cst_139 = arith.constant dense<0.000000e+00> : vector<8xf32>
      %163 = vector.multi_reduction <add>, %162, %cst_139 [1] : vector<8x32xf32> to vector<8xf32>
      %164 = vector.shape_cast %163 : vector<8xf32> to vector<8x1xf32>
      %cst_140 = arith.constant 3.200000e+01 : f32
      %165 = vector.broadcast %cst_140 : f32 to vector<8x1xf32>
      %166 = arith.divf %164, %165 : vector<8x1xf32>
      %cst_141 = arith.constant 9.99999974E-6 : f32
      %167 = vector.broadcast %cst_141 : f32 to vector<8x1xf32>
      %168 = arith.addf %166, %167 : vector<8x1xf32>
      %169 = math.rsqrt %168 : vector<8x1xf32>
      %170 = vector.broadcast %169 : vector<8x1xf32> to vector<8x32xf32>
      %171 = arith.mulf %161, %170 : vector<8x32xf32>
      %172 = vector.broadcast %154 : vector<1x32xf32> to vector<8x32xf32>
      %173 = arith.mulf %171, %172 : vector<8x32xf32>
      %174 = vector.broadcast %155 : vector<1x32xf32> to vector<8x32xf32>
      %175 = arith.addf %173, %174 : vector<8x32xf32>
      %176 = arith.truncf %175 : vector<8x32xf32> to vector<8x32xbf16>
      %c0_142 = arith.constant 0 : index
      %c0_143 = arith.constant 0 : index
      %c0_144 = arith.constant 0 : index
      %177 = vector.load %arg15[%c0_142, %c0_143, %c0_144] : memref<1x8x32xbf16, #tpu.memory_space<vmem>>, vector<1x8x32xbf16>
      %178 = vector.shape_cast %177 : vector<1x8x32xbf16> to vector<8x32xbf16>
      %179 = vector.shape_cast %176 : vector<8x32xbf16> to vector<1x8x32xbf16>
      tpu.vector_store %arg15[%c0_142, %c0_143, %c0_144], %179 {strides = array<i32>} : memref<1x8x32xbf16, #tpu.memory_space<vmem>>, vector<1x8x32xbf16>,
    } else {
    }
    return
  }
  func.func @transform_0(%arg0: i32, %arg1: i32, %arg2: i32) -> (i32, i32, i32) {
    %c0_i32 = arith.constant 0 : i32
    %c0_i32_0 = arith.constant 0 : i32
    return %arg0, %arg1, %c0_i32 : i32, i32, i32
  }
  func.func @transform_1(%arg0: i32, %arg1: i32, %arg2: i32) -> (i32, i32, i32) {
    %c0_i32 = arith.constant 0 : i32
    %c0_i32_0 = arith.constant 0 : i32
    return %arg0, %arg2, %c0_i32 : i32, i32, i32
  }
  func.func @transform_2(%arg0: i32, %arg1: i32, %arg2: i32) -> (i32, i32, i32) {
    %c0_i32 = arith.constant 0 : i32
    %c0_i32_0 = arith.constant 0 : i32
    %c0_i32_1 = arith.constant 0 : i32
    %c0_i32_2 = arith.constant 0 : i32
    return %c0_i32, %c0_i32_0, %c0_i32_1 : i32, i32, i32
  }
  func.func @transform_3(%arg0: i32, %arg1: i32, %arg2: i32) -> (i32, i32, i32) {
    %c0_i32 = arith.constant 0 : i32
    %c0_i32_0 = arith.constant 0 : i32
    %c0_i32_1 = arith.constant 0 : i32
    %c0_i32_2 = arith.constant 0 : i32
    return %c0_i32, %c0_i32_0, %c0_i32_1 : i32, i32, i32
  }
  func.func @transform_4(%arg0: i32, %arg1: i32, %arg2: i32) -> (i32, i32, i32) {
    %c0_i32 = arith.constant 0 : i32
    %c0_i32_0 = arith.constant 0 : i32
    %c0_i32_1 = arith.constant 0 : i32
    %c0_i32_2 = arith.constant 0 : i32
    return %c0_i32, %c0_i32_0, %c0_i32_1 : i32, i32, i32
  }
  func.func @transform_5(%arg0: i32, %arg1: i32, %arg2: i32) -> (i32, i32, i32) {
    %c0_i32 = arith.constant 0 : i32
    %c0_i32_0 = arith.constant 0 : i32
    %c0_i32_1 = arith.constant 0 : i32
    %c0_i32_2 = arith.constant 0 : i32
    return %c0_i32, %c0_i32_0, %c0_i32_1 : i32, i32, i32
  }
  func.func @transform_6(%arg0: i32, %arg1: i32, %arg2: i32) -> (i32, i32, i32) {
    %c0_i32 = arith.constant 0 : i32
    %c0_i32_0 = arith.constant 0 : i32
    %c0_i32_1 = arith.constant 0 : i32
    %c0_i32_2 = arith.constant 0 : i32
    return %c0_i32, %c0_i32_0, %c0_i32_1 : i32, i32, i32
  }
  func.func @transform_7(%arg0: i32, %arg1: i32, %arg2: i32) -> (i32, i32, i32) {
    %c0_i32 = arith.constant 0 : i32
    %c0_i32_0 = arith.constant 0 : i32
    %c0_i32_1 = arith.constant 0 : i32
    %c0_i32_2 = arith.constant 0 : i32
    return %c0_i32, %c0_i32_0, %c0_i32_1 : i32, i32, i32
  }
  func.func @transform_8(%arg0: i32, %arg1: i32, %arg2: i32) -> (i32, i32) {
    %c0_i32 = arith.constant 0 : i32
    %c0_i32_0 = arith.constant 0 : i32
    %c0_i32_1 = arith.constant 0 : i32
    return %c0_i32, %c0_i32_0 : i32, i32
  }
  func.func @transform_9(%arg0: i32, %arg1: i32, %arg2: i32) -> (i32, i32) {
    %c0_i32 = arith.constant 0 : i32
    %c0_i32_0 = arith.constant 0 : i32
    %c0_i32_1 = arith.constant 0 : i32
    return %c0_i32, %c0_i32_0 : i32, i32
  }
  func.func @transform_10(%arg0: i32, %arg1: i32, %arg2: i32) -> (i32, i32) {
    %c0_i32 = arith.constant 0 : i32
    %c0_i32_0 = arith.constant 0 : i32
    %c0_i32_1 = arith.constant 0 : i32
    return %c0_i32, %c0_i32_0 : i32, i32
  }
  func.func @transform_11(%arg0: i32, %arg1: i32, %arg2: i32) -> (i32, i32) {
    %c0_i32 = arith.constant 0 : i32
    %c0_i32_0 = arith.constant 0 : i32
    %c0_i32_1 = arith.constant 0 : i32
    return %c0_i32, %c0_i32_0 : i32, i32
  }
  func.func @transform_12(%arg0: i32, %arg1: i32, %arg2: i32) -> (i32, i32, i32) {
    %c0_i32 = arith.constant 0 : i32
    %c0_i32_0 = arith.constant 0 : i32
    return %arg0, %arg1, %c0_i32 : i32, i32, i32
  }
}

module attributes {stable_mosaic.version = 11 : i64} {
  func.func @_ffn_ln_kernel(%arg0: i32, %arg1: i32, %arg2: i32, %arg3: memref<1x8x32xbf16, #tpu.memory_space<vmem>>, %arg4: memref<32x64xbf16, #tpu.memory_space<vmem>>, %arg5: memref<1x64xf32, #tpu.memory_space<vmem>>, %arg6: memref<64x32xbf16, #tpu.memory_space<vmem>>, %arg7: memref<1x32xf32, #tpu.memory_space<vmem>>, %arg8: memref<1x32xf32, #tpu.memory_space<vmem>>, %arg9: memref<1x32xf32, #tpu.memory_space<vmem>>, %arg10: memref<1x8x32xbf16, #tpu.memory_space<vmem>>, %arg11: memref<8x32xf32, #tpu.memory_space<vmem>>) attributes {dimension_semantics = [#tpu.dimension_semantics<parallel>, #tpu.dimension_semantics<parallel>, #tpu.dimension_semantics<arbitrary>], iteration_bounds = array<i64: 2, 1, 1>, scalar_prefetch = 0 : i64, scratch_operands = 1 : i64, tpu.core_type = #tpu.core_type<tc>, window_params = [{transform_indices = @transform_0, window_bounds = array<i64: 1, 8, 32>}, {transform_indices = @transform_1, window_bounds = array<i64: 32, 64>}, {transform_indices = @transform_2, window_bounds = array<i64: 1, 64>}, {transform_indices = @transform_3, window_bounds = array<i64: 64, 32>}, {pipeline_mode = #tpu.pipeline_mode<synchronous>, transform_indices = @transform_4, window_bounds = array<i64: 1, 32>}, {pipeline_mode = #tpu.pipeline_mode<synchronous>, transform_indices = @transform_5, window_bounds = array<i64: 1, 32>}, {pipeline_mode = #tpu.pipeline_mode<synchronous>, transform_indices = @transform_6, window_bounds = array<i64: 1, 32>}, {transform_indices = @transform_7, window_bounds = array<i64: 1, 8, 32>}]} {
    %c0_i32 = arith.constant 0 : i32
    %0 = arith.cmpi eq, %arg2, %c0_i32 : i32
    %1 = arith.extui %0 : i1 to i32
    %c0_i32_0 = arith.constant 0 : i32
    %2 = arith.cmpi ne, %1, %c0_i32_0 : i32
    scf.if %2 {
      %cst_19 = arith.constant 0.000000e+00 : f32
      %28 = vector.broadcast %cst_19 : f32 to vector<8x32xf32>
      %c0_20 = arith.constant 0 : index
      %c0_21 = arith.constant 0 : index
      %29 = vector.load %arg11[%c0_20, %c0_21] : memref<8x32xf32, #tpu.memory_space<vmem>>, vector<8x32xf32>
      tpu.vector_store %arg11[%c0_20, %c0_21], %28 {strides = array<i32>} : memref<8x32xf32, #tpu.memory_space<vmem>>, vector<8x32xf32>,
    } else {
    }
    %c0 = arith.constant 0 : index
    %c0_1 = arith.constant 0 : index
    %c0_2 = arith.constant 0 : index
    %3 = vector.load %arg3[%c0, %c0_1, %c0_2] : memref<1x8x32xbf16, #tpu.memory_space<vmem>>, vector<1x8x32xbf16>
    %4 = vector.shape_cast %3 : vector<1x8x32xbf16> to vector<8x32xbf16>
    %c0_3 = arith.constant 0 : index
    %c0_4 = arith.constant 0 : index
    %5 = vector.load %arg4[%c0_3, %c0_4] : memref<32x64xbf16, #tpu.memory_space<vmem>>, vector<32x64xbf16>
    %cst = arith.constant dense<0.000000e+00> : vector<8x64xf32>
    %6 = tpu.matmul %4, %5, %cst {dimension_numbers = #tpu.dot_dimension_numbers<[1], [0], [0], [1], [0, 0, 1, 1], [], []>} : vector<8x32xbf16>, vector<32x64xbf16>, vector<8x64xf32> -> vector<8x64xf32>
    %c0_5 = arith.constant 0 : index
    %c0_6 = arith.constant 0 : index
    %7 = vector.load %arg5[%c0_5, %c0_6] : memref<1x64xf32, #tpu.memory_space<vmem>>, vector<1x64xf32>
    %8 = vector.broadcast %7 : vector<1x64xf32> to vector<8x64xf32>
    %9 = arith.addf %6, %8 : vector<8x64xf32>
    %cst_7 = arith.constant 5.000000e-01 : f32
    %10 = vector.broadcast %cst_7 : f32 to vector<8x64xf32>
    %11 = arith.mulf %10, %9 : vector<8x64xf32>
    %cst_8 = arith.constant 2.000000e+00 : f32
    %12 = math.sqrt %cst_8 : f32
    %13 = vector.broadcast %12 : f32 to vector<8x64xf32>
    %14 = arith.divf %9, %13 : vector<8x64xf32>
    %15 = math.erf %14 : vector<8x64xf32>
    %cst_9 = arith.constant 1.000000e+00 : f32
    %16 = vector.broadcast %cst_9 : f32 to vector<8x64xf32>
    %17 = arith.addf %16, %15 : vector<8x64xf32>
    %18 = arith.mulf %11, %17 : vector<8x64xf32>
    %c0_10 = arith.constant 0 : index
    %c0_11 = arith.constant 0 : index
    %19 = vector.load %arg11[%c0_10, %c0_11] : memref<8x32xf32, #tpu.memory_space<vmem>>, vector<8x32xf32>
    %20 = arith.truncf %18 : vector<8x64xf32> to vector<8x64xbf16>
    %c0_12 = arith.constant 0 : index
    %c0_13 = arith.constant 0 : index
    %21 = vector.load %arg6[%c0_12, %c0_13] : memref<64x32xbf16, #tpu.memory_space<vmem>>, vector<64x32xbf16>
    %cst_14 = arith.constant dense<0.000000e+00> : vector<8x32xf32>
    %22 = tpu.matmul %20, %21, %cst_14 {dimension_numbers = #tpu.dot_dimension_numbers<[1], [0], [0], [1], [0, 0, 1, 1], [], []>} : vector<8x64xbf16>, vector<64x32xbf16>, vector<8x32xf32> -> vector<8x32xf32>
    %23 = arith.addf %19, %22 : vector<8x32xf32>
    %c0_15 = arith.constant 0 : index
    %c0_16 = arith.constant 0 : index
    %24 = vector.load %arg11[%c0_15, %c0_16] : memref<8x32xf32, #tpu.memory_space<vmem>>, vector<8x32xf32>
    tpu.vector_store %arg11[%c0_15, %c0_16], %23 {strides = array<i32>} : memref<8x32xf32, #tpu.memory_space<vmem>>, vector<8x32xf32>,
    %c0_i32_17 = arith.constant 0 : i32
    %25 = arith.cmpi eq, %arg2, %c0_i32_17 : i32
    %26 = arith.extui %25 : i1 to i32
    %c0_i32_18 = arith.constant 0 : i32
    %27 = arith.cmpi ne, %26, %c0_i32_18 : i32
    scf.if %27 {
      %c0_19 = arith.constant 0 : index
      %c0_20 = arith.constant 0 : index
      %28 = vector.load %arg11[%c0_19, %c0_20] : memref<8x32xf32, #tpu.memory_space<vmem>>, vector<8x32xf32>
      %c0_21 = arith.constant 0 : index
      %c0_22 = arith.constant 0 : index
      %29 = vector.load %arg7[%c0_21, %c0_22] : memref<1x32xf32, #tpu.memory_space<vmem>>, vector<1x32xf32>
      %30 = vector.broadcast %29 : vector<1x32xf32> to vector<8x32xf32>
      %31 = arith.addf %28, %30 : vector<8x32xf32>
      %32 = arith.extf %4 : vector<8x32xbf16> to vector<8x32xf32>
      %33 = arith.addf %32, %31 : vector<8x32xf32>
      %c0_23 = arith.constant 0 : index
      %c0_24 = arith.constant 0 : index
      %34 = vector.load %arg8[%c0_23, %c0_24] : memref<1x32xf32, #tpu.memory_space<vmem>>, vector<1x32xf32>
      %c0_25 = arith.constant 0 : index
      %c0_26 = arith.constant 0 : index
      %35 = vector.load %arg9[%c0_25, %c0_26] : memref<1x32xf32, #tpu.memory_space<vmem>>, vector<1x32xf32>
      %cst_27 = arith.constant dense<0.000000e+00> : vector<8xf32>
      %36 = vector.multi_reduction <add>, %33, %cst_27 [1] : vector<8x32xf32> to vector<8xf32>
      %37 = vector.shape_cast %36 : vector<8xf32> to vector<8x1xf32>
      %cst_28 = arith.constant 3.200000e+01 : f32
      %38 = vector.broadcast %cst_28 : f32 to vector<8x1xf32>
      %39 = arith.divf %37, %38 : vector<8x1xf32>
      %40 = vector.broadcast %39 : vector<8x1xf32> to vector<8x32xf32>
      %41 = arith.subf %33, %40 : vector<8x32xf32>
      %42 = arith.mulf %41, %41 : vector<8x32xf32>
      %cst_29 = arith.constant dense<0.000000e+00> : vector<8xf32>
      %43 = vector.multi_reduction <add>, %42, %cst_29 [1] : vector<8x32xf32> to vector<8xf32>
      %44 = vector.shape_cast %43 : vector<8xf32> to vector<8x1xf32>
      %cst_30 = arith.constant 3.200000e+01 : f32
      %45 = vector.broadcast %cst_30 : f32 to vector<8x1xf32>
      %46 = arith.divf %44, %45 : vector<8x1xf32>
      %cst_31 = arith.constant 9.99999974E-6 : f32
      %47 = vector.broadcast %cst_31 : f32 to vector<8x1xf32>
      %48 = arith.addf %46, %47 : vector<8x1xf32>
      %49 = math.rsqrt %48 : vector<8x1xf32>
      %50 = vector.broadcast %49 : vector<8x1xf32> to vector<8x32xf32>
      %51 = arith.mulf %41, %50 : vector<8x32xf32>
      %52 = vector.broadcast %34 : vector<1x32xf32> to vector<8x32xf32>
      %53 = arith.mulf %51, %52 : vector<8x32xf32>
      %54 = vector.broadcast %35 : vector<1x32xf32> to vector<8x32xf32>
      %55 = arith.addf %53, %54 : vector<8x32xf32>
      %56 = arith.truncf %55 : vector<8x32xf32> to vector<8x32xbf16>
      %c0_32 = arith.constant 0 : index
      %c0_33 = arith.constant 0 : index
      %c0_34 = arith.constant 0 : index
      %57 = vector.load %arg10[%c0_32, %c0_33, %c0_34] : memref<1x8x32xbf16, #tpu.memory_space<vmem>>, vector<1x8x32xbf16>
      %58 = vector.shape_cast %57 : vector<1x8x32xbf16> to vector<8x32xbf16>
      %59 = vector.shape_cast %56 : vector<8x32xbf16> to vector<1x8x32xbf16>
      tpu.vector_store %arg10[%c0_32, %c0_33, %c0_34], %59 {strides = array<i32>} : memref<1x8x32xbf16, #tpu.memory_space<vmem>>, vector<1x8x32xbf16>,
    } else {
    }
    return
  }
  func.func @transform_0(%arg0: i32, %arg1: i32, %arg2: i32) -> (i32, i32, i32) {
    %c0_i32 = arith.constant 0 : i32
    %c0_i32_0 = arith.constant 0 : i32
    return %arg0, %arg1, %c0_i32 : i32, i32, i32
  }
  func.func @transform_1(%arg0: i32, %arg1: i32, %arg2: i32) -> (i32, i32) {
    %c0_i32 = arith.constant 0 : i32
    %c0_i32_0 = arith.constant 0 : i32
    return %c0_i32, %arg2 : i32, i32
  }
  func.func @transform_2(%arg0: i32, %arg1: i32, %arg2: i32) -> (i32, i32) {
    %c0_i32 = arith.constant 0 : i32
    %c0_i32_0 = arith.constant 0 : i32
    return %c0_i32, %arg2 : i32, i32
  }
  func.func @transform_3(%arg0: i32, %arg1: i32, %arg2: i32) -> (i32, i32) {
    %c0_i32 = arith.constant 0 : i32
    %c0_i32_0 = arith.constant 0 : i32
    return %arg2, %c0_i32 : i32, i32
  }
  func.func @transform_4(%arg0: i32, %arg1: i32, %arg2: i32) -> (i32, i32) {
    %c0_i32 = arith.constant 0 : i32
    %c0_i32_0 = arith.constant 0 : i32
    %c0_i32_1 = arith.constant 0 : i32
    return %c0_i32, %c0_i32_0 : i32, i32
  }
  func.func @transform_5(%arg0: i32, %arg1: i32, %arg2: i32) -> (i32, i32) {
    %c0_i32 = arith.constant 0 : i32
    %c0_i32_0 = arith.constant 0 : i32
    %c0_i32_1 = arith.constant 0 : i32
    return %c0_i32, %c0_i32_0 : i32, i32
  }
  func.func @transform_6(%arg0: i32, %arg1: i32, %arg2: i32) -> (i32, i32) {
    %c0_i32 = arith.constant 0 : i32
    %c0_i32_0 = arith.constant 0 : i32
    %c0_i32_1 = arith.constant 0 : i32
    return %c0_i32, %c0_i32_0 : i32, i32
  }
  func.func @transform_7(%arg0: i32, %arg1: i32, %arg2: i32) -> (i32, i32, i32) {
    %c0_i32 = arith.constant 0 : i32
    %c0_i32_0 = arith.constant 0 : i32
    return %arg0, %arg1, %c0_i32 : i32, i32, i32
  }
}

</mosaic_0001>

<bundles_post_ra>
// kernel: transformer_forward.5
= control target key start
LH: loop header
LB: loop body
LE: loop exit
PB: predicated region body
PF: predicated region fallthrough
CT: control target
= control target key end

     0   :  { %s652_s18 = smov 0   ;;  %s708_s0 = inlined_call_operand.vmem [shape: bf16[2,10,32], index: 0, kind: input, shape index: {}]   ;;  %s709_s1 = inlined_call_operand.vmem [shape: bf16[3,32,32], index: 1, kind: input, shape index: {}]   ;;  %s710_s2 = inlined_call_operand.vmem [shape: f32[1,32], index: 2, kind: input, shape index: {}]   ;;  %s711_s3 = inlined_call_operand.vmem [shape: f32[1,32], index: 3, kind: input, shape index: {}]   ;;  %s712_s4 = inlined_call_operand.vmem [shape: f32[1,32], index: 4, kind: input, shape index: {}]   ;;  %s713_s5 = inlined_call_operand.vmem [shape: bf16[2,8,32], index: 5, kind: output, shape index: {}]  }
   0x1 LB: > { %s524_s19 = sadd.s32 4294967295, %s618_s18   ;;  %p528_p0 = scmp.ge.s32.totalorder %s618_s18, 1  ;;  %s618_s18 = sphi %s652_s18, %s15_s18  }
   0x2   : > { %p187_p1 = scmp.lt.s32.totalorder %s618_s18, 3 }
   0x4   : > { %p188_p2 = pnand %p528_p0, %p187_p1 }
   0x5   : > { %p214_p3 = scmp.lt.s32.totalorder (!%p188_p2), %s524_s19, 1 }
   0x6   : > { %191 = sbr.rel (%p188_p2) target bundleno = 559 (0x22f), region = 40 }
   0xb   : > { %v600_v0 = vld [vmem:[%s709_s1 + $0x18] sm:$0xff]   ;;  %v620_v1 = vmov 0.0   ;;  %v601_v2 = vld [vmem:[%s709_s1 + $0x8] sm:$0xff]   ;;  %v602_v3 = vld [vmem:[%s709_s1 + $0x10] sm:$0xff]   ;;  %vm621_vm0 = vmmov 0   ;;  %s715_s19 = smov (!%p214_p3, %s524_s19), 1 }
   0xc   : > { %566 = vmatprep.subr.bf16.mxu0 %v620_v1  ;;  %574 = vmatprep.subr.bf16.mxu1 %v620_v1  ;;  %v603_v4 = vld [vmem:[%s709_s1] sm:$0xff]   ;;  %s556_s28 = sshll.u32 %s715_s19, 3  ;;  %vm259_vm1 = vcmask 261120   ;;  %v605_v11 = vld [vmem:[%s709_s1 + $0x28] sm:$0xff]   ;;  %s531_s17 = sshll.u32 %s715_s19, 2  ;;  %vm469_vm2 = vcmask 257024  }
   0xd   : > { %567 = vmatpush3.bf16.msra.mxu0 %v600_v0  ;;  %570 = vmatprep.mubr.msk.bf16.mxu0 %vm621_vm0, %v620_v1  ;;  %s218_s6 = scalar_lea.vmem %s708_s0, %s556_s28  ;;  %v606_v15 = vld [vmem:[%s709_s1 + $0x20] sm:$0xff]   ;;  %s222_s22 = scalar_lea.vmem %s713_s5, %s531_s17 }
   0xe   : > { %575 = vmatpush3.bf16.msra.mxu1 %v601_v2  ;;  %568 = vmatprep.subr.bf16.mxu0 %v620_v1  ;;  %v224_v5 = vld [vmem:[%s218_s6] sm:$0xf]  ;;  %v229_v6 = vld [vmem:[%s218_s6 + $0x4] sm:$0x1] }
   0xf   : > { %576 = vmatprep.subr.bf16.mxu1 %v620_v1  ;;  %578 = vmatprep.mubr.msk.bf16.mxu1 %vm621_vm0, %v620_v1  ;;  %v536_v7 = vcombine.low %v224_v5, %v229_v6  ;;  %v358_v12 = vld [vmem:[%s218_s6] sm:$0xe]  ;;  %v551_v27 = vld [vmem:[%s710_s2] ss:$0 sm:$0xff] }
  0x10   : > { %v547_v14 = vcombine.low %v358_v12, %v229_v6  ;;  %v552_v48 = vld [vmem:[%s711_s3] ss:$0 sm:$0xff] }
  0x11   : > { %569 = vmatpush3.bf16.msra.mxu0 %v602_v3  ;;  %v241_v8 = vshrl.u32 %v536_v7, 16  ;;  %v243_v9 = vshll.u32 %v536_v7, 16  ;;  %v553_v50 = vld [vmem:[%s712_s4] ss:$0 sm:$0xff] }
  0x12   : > { %577 = vmatpush3.bf16.msra.mxu1 %v603_v4  ;;  %582 = vmatprep.subr.bf16.mxu0 %v620_v1  ;;  %v367_v16 = vrot.slane %v547_v14, 1 }
  0x13   : > { %v245_v10 = vrot.slane %v243_v9, 1 }
  0x15   : > { %579 = vmatmul.mubr.msk.bf16.vlgmr.msra.gmra.mxu1 %vm259_vm1, %v224_v5  ;;  %v246_v13 = vor.u32 %v245_v10, %v241_v8 }
  0x17   : > { %571 = vmatmul.mubr.msk.bf16.vlgmr.msra.gmra.mxu0 %vm259_vm1, %v246_v13 }
  0x18   : > { %583 = vmatpush3.bf16.msra.mxu0 %v605_v11  ;;  %586 = vmatprep.mubr.msk.bf16.mxu0 %vm621_vm0, %v620_v1 }
  0x19   : > { %584 = vmatprep.subr.bf16.mxu0 %v620_v1 }
  0x1c   : > { %585 = vmatpush3.bf16.msra.mxu0 %v606_v15 }
  0x1f   : > { %587 = vmatmul.mubr.msk.bf16.vlgmr.msra.gmra.mxu0 %vm259_vm1, %v367_v16 }
  0xd5   : > { %v352_v17 = vpop.f32.mrf.mxu1 }
  0xd7   : > { %v580_v18 = vpop.f32.mrf.mxu1  ;;  %v297_v21 = vpop.f32.mrf.mxu0 }
  0xd8   : > { %v353_v25 = vadd.f32 %v352_v17, %v297_v21 }
  0xd9   : > { %v355_v19 = vpop.f32.mrf.mxu1  ;;  %v572_v22 = vpop.f32.mrf.mxu0 }
  0xdb   : > { %v581_v20 = vpop.f32.mrf.mxu1  ;;  %v300_v23 = vpop.f32.mrf.mxu0 }
  0xdd   : > { %v573_v24 = vpop.f32.mrf.mxu0 }
  0xdf   : > { %v417_v26 = vpop.f32.mrf.mxu0 }
  0xe0   : > { %v423_v28 = vadd.f32 %v417_v26, %v353_v25 }
  0xe1   : > { %v588_v29 = vpop.f32.mrf.mxu0 }
  0xe2   : > { %v431_v30 = vadd.f32 %v551_v27, %v423_v28 }
  0xe3   : > { %v420_v31 = vpop.f32.mrf.mxu0 }
  0xe4   : > { %v434_v32 = vmul.f32 0.70710677, %v431_v30  ;;  %v432_v35 = vmul.f32 0.5, %v431_v30 }
  0xe5   : > { %v589_v33 = vpop.f32.mrf.mxu0 }
  0xe6   : > { %608 = verf.f32 %v434_v32 }
  0xf3   : > { %v609_v34 = vpop.eup %608 }
  0xf4   : > { %v436_v36 = vadd.f32 1.0, %v609_v34 }
  0xf6   : > { %v437_v37 = vmul.f32 %v436_v36, %v432_v35 }
  0xf8   : > { %v440_v38 = vsel %vm259_vm1, %v437_v37, 0.0 }
  0xf9   : > { %441 = vadd.xlane.f32.xlu0 %v440_v38 }
 0x182   : > { %v442_v39 = vpop.xlane.xlu0 %441 }
 0x183   : > { %v444_v40 = vmul.f32 0.03125, %v442_v39 }
 0x185   : > { %v445_v41 = vsub.f32 %v437_v37, %v444_v40 }
 0x187   : > { %v446_v42 = vmul.f32 %v445_v41, %v445_v41 }
 0x189   : > { %v447_v43 = vsel %vm259_vm1, %v446_v42, 0.0 }
 0x18a   : > { %448 = vadd.xlane.f32.xlu0 %v447_v43 }
 0x213   : > { %v449_v44 = vpop.xlane.xlu0 %448 }
 0x214   : > { %v450_v45 = vmul.f32 0.03125, %v449_v44 }
 0x216   : > { %v451_v46 = vadd.f32 1e-05, %v450_v45 }
 0x218   : > { %610 = vrsqrt.f32 %v451_v46 }
 0x225   : > { %v611_v47 = vpop.eup %610 }
 0x226   : > { %v453_v49 = vmul.f32 %v611_v47, %v445_v41 }
 0x228   : > { %v460_v51 = vmul.f32 %v552_v48, %v453_v49 }
 0x22a   : > { %v467_v52 = vadd.f32 %v553_v50, %v460_v51 }
 0x22c   : > { %v468_v53 = vpack.c.bf16 %v467_v52, %v467_v52 }
 0x22e   : > { %470 = vst.msk [vmem:[%s222_s22] sm:$0xf] %vm469_vm2, %v468_v53 }
 0x22f PF: > { %s15_s18 = sadd.s32 1, %s618_s18  }
 0x230   : > { %p12_p4 = scmp.ge.s32.totalorder %s15_s18, 4  }
 0x232   :  { %14 = sbr.rel (!%p12_p4) target bundleno = 1 (0x1), region = 72 }

// kernel: transformer_forward.7
= control target key start
LH: loop header
LB: loop body
LE: loop exit
PB: predicated region body
PF: predicated region fallthrough
CT: control target
= control target key end

     0   :  { %s847_s24 = smov 0   ;;  %s849_s25 = smov 0   ;;  %s922_s0 = inlined_call_operand.vmem [shape: bf16[2,8,32], index: 0, kind: input, shape index: {}]   ;;  %s923_s1 = inlined_call_operand.vmem [shape: bf16[32,64], index: 1, kind: input, shape index: {}]   ;;  %s924_s2 = inlined_call_operand.vmem [shape: f32[1,64], index: 2, kind: input, shape index: {}]   ;;  %s925_s3 = inlined_call_operand.vmem [shape: bf16[64,32], index: 3, kind: input, shape index: {}]   ;;  %s926_s4 = inlined_call_operand.vmem [shape: f32[1,32], index: 4, kind: input, shape index: {}]   ;;  %s927_s5 = inlined_call_operand.vmem [shape: f32[1,32], index: 5, kind: input, shape index: {}]   ;;  %s928_s6 = inlined_call_operand.vmem [shape: f32[1,32], index: 6, kind: input, shape index: {}]   ;;  %s929_s7 = inlined_call_operand.vmem [shape: bf16[2,8,32], index: 7, kind: output, shape index: {}]  }
   0x1   :  { %s851_s26 = smov 0  }
   0x2 LB: > { %s36_s27 = sadd.s32 1, %s799_s25  ;;  %p700_p0 = scmp.ge.s32.totalorder %s803_s26, 1  ;;  %s803_s26 = sphi %s851_s26, %s17_s26   ;;  %s799_s25 = sphi %s849_s25, %s931_s25   ;;  %s795_s24 = sphi %s847_s24, %s930_s24  }
   0x3   : > { %p38_p1 = scmp.ge.s32.totalorder %s36_s27, 2  ;;  %p290_p2 = scmp.lt.s32.totalorder %s803_s26, 3 }
   0x5   : > { %s933_s27 = smov (%p38_p1, %s36_s27), 0  ;;  %p291_p3 = pnand %p700_p0, %p290_p2 }
   0x6   : > { %p338_p4 = scmp.lt.s32.totalorder (!%p291_p3), %s795_s24, 1 }
   0x7   : > { %294 = sbr.rel (%p291_p3) target bundleno = 756 (0x2f4), region = 48 }
   0xc   : > { %v771_v0 = vld [vmem:[%s923_s1 + $0x8] sm:$0xff]   ;;  %v805_v1 = vmov 0.0   ;;  %v772_v2 = vld [vmem:[%s923_s1] sm:$0xff]   ;;  %vm806_vm0 = vmmov 0   ;;  %vm370_vm1 = vcmask 261120   ;;  %s935_s24 = smov (!%p338_p4, %s795_s24), 1 }
   0xd   : > { %725 = vmatprep.subr.bf16.mxu0 %v805_v1  ;;  %733 = vmatprep.subr.bf16.mxu1 %v805_v1  ;;  %371 = vst.msk [vmem:[#allocation2] sm:$0xff] %vm370_vm1, %v805_v1  ;;  %s701_s9 = sshll.u32 %s935_s24, 2  ;;  %v773_v4 = vld [vmem:[%s925_s3 + $0x18] sm:$0xff]   ;;  %v774_v5 = vld [vmem:[%s925_s3 + $0x10] sm:$0xff]   ;;  %v775_v6 = vld [vmem:[%s925_s3 + $0x8] sm:$0xff]   ;;  %vm480_vm2 = vcmask 523264  }
   0xe   : > { %726 = vmatpush3.bf16.msra.mxu0 %v771_v0  ;;  %729 = vmatprep.mubr.msk.bf16.mxu0 %vm806_vm0, %v805_v1  ;;  %s344_s12 = scalar_lea.vmem %s922_s0, %s701_s9  ;;  %v776_v7 = vld [vmem:[%s925_s3] sm:$0xff]   ;;  %s364_s13 = scalar_lea.vmem %s929_s7, %s701_s9  ;;  %vm571_vm3 = vcmask 257024  }
   0xf   : > { %727 = vmatprep.subr.bf16.mxu0 %v805_v1  ;;  %741 = vmatprep.mubr.msk.bf16.mxu1 %vm806_vm0, %v805_v1  ;;  %v372_v3 = vld [vmem:[%s344_s12] sm:$0xf] }
  0x10   : > { %734 = vmatpush3.bf16.msra.mxu1 %v773_v4  ;;  %v703_v8 = vld [vmem:[%s924_s2] ss:$0 sm:$0xff]  ;;  %v538_v27 = vunpack.c.l.bf16 %v372_v3 }
  0x11   : > { %735 = vmatprep.subr.bf16.mxu1 %v805_v1  ;;  %v712_v26 = vld [vmem:[%s926_s4] ss:$0 sm:$0xff] }
  0x12   : > { %728 = vmatpush3.bf16.msra.mxu0 %v772_v2  ;;  %v713_v41 = vld [vmem:[%s927_s5] ss:$0 sm:$0xff] }
  0x13   : > { %v714_v43 = vld [vmem:[%s928_s6] ss:$0 sm:$0xff] }
  0x14   : > { %736 = vmatpush3.bf16.msra.mxu1 %v774_v5  ;;  %v446_v20 = vld [vmem:[#allocation2] sm:$0xff] }
  0x15   : > { %730 = vmatmul.mubr.msk.bf16.vlgmr.msra.gmra.mxu0 %vm370_vm1, %v372_v3  ;;  %737 = vmatprep.subr.bf16.mxu1 %v805_v1 }
  0x18   : > { %738 = vmatpush3.bf16.msra.mxu1 %v775_v6 }
  0x19   : > { %739 = vmatprep.subr.bf16.mxu1 %v805_v1 }
  0x1c   : > { %740 = vmatpush3.bf16.msra.mxu1 %v776_v7 }
  0xd5   : > { %v434_v9 = vpop.f32.mrf.mxu0 }
  0xd6   : > { %v435_v10 = vadd.f32 %v703_v8, %v434_v9 }
  0xd7   : > { %v731_v11 = vpop.f32.mrf.mxu0 }
  0xd8   : > { %v442_v12 = vmul.f32 0.70710677, %v435_v10  ;;  %v440_v16 = vmul.f32 0.5, %v435_v10 }
  0xd9   : > { %v437_v13 = vpop.f32.mrf.mxu0 }
  0xda   : > { %777 = verf.f32 %v442_v12 }
  0xdb   : > { %v732_v14 = vpop.f32.mrf.mxu0 }
  0xe7   : > { %v778_v15 = vpop.eup %777 }
  0xe8   : > { %v444_v17 = vadd.f32 1.0, %v778_v15 }
  0xea   : > { %v445_v18 = vmul.f32 %v444_v17, %v440_v16 }
  0xec   : > { %v447_v19 = vpack.c.bf16 %v445_v18, %v445_v18 }
  0xee   : > { %742 = vmatmul.mubr.msk.bf16.vlgmr.msra.gmra.mxu1 %vm480_vm2, %v447_v19 }
 0x1ae   : > { %v518_v21 = vpop.f32.mrf.mxu1 }
 0x1af   : > { %v524_v22 = vadd.f32 %v518_v21, %v446_v20 }
 0x1b0   : > { %v743_v23 = vpop.f32.mrf.mxu1 }
 0x1b1   : > { %525 = vst.msk [vmem:[#allocation2] sm:$0xff] %vm370_vm1, %v524_v22 }
 0x1b2   : > { %v521_v24 = vpop.f32.mrf.mxu1 }
 0x1b4   : > { %v744_v25 = vpop.f32.mrf.mxu1 }
 0x1b8   : > { %v529_v28 = vld [vmem:[#allocation2] sm:$0xff] }
 0x1b9   : > { %v537_v29 = vadd.f32 %v712_v26, %v529_v28 }
 0x1bb   : > { %v539_v30 = vadd.f32 %v538_v27, %v537_v29 }
 0x1bd   : > { %v542_v31 = vsel %vm370_vm1, %v539_v30, 0.0 }
 0x1be   : > { %543 = vadd.xlane.f32.xlu0 %v542_v31 }
 0x247   : > { %v544_v32 = vpop.xlane.xlu0 %543 }
 0x248   : > { %v546_v33 = vmul.f32 0.03125, %v544_v32 }
 0x24a   : > { %v547_v34 = vsub.f32 %v539_v30, %v546_v33 }
 0x24c   : > { %v548_v35 = vmul.f32 %v547_v34, %v547_v34 }
 0x24e   : > { %v549_v36 = vsel %vm370_vm1, %v548_v35, 0.0 }
 0x24f   : > { %550 = vadd.xlane.f32.xlu0 %v549_v36 }
 0x2d8   : > { %v551_v37 = vpop.xlane.xlu0 %550 }
 0x2d9   : > { %v552_v38 = vmul.f32 0.03125, %v551_v37 }
 0x2db   : > { %v553_v39 = vadd.f32 1e-05, %v552_v38 }
 0x2dd   : > { %779 = vrsqrt.f32 %v553_v39 }
 0x2ea   : > { %v780_v40 = vpop.eup %779 }
 0x2eb   : > { %v555_v42 = vmul.f32 %v780_v40, %v547_v34 }
 0x2ed   : > { %v562_v44 = vmul.f32 %v713_v41, %v555_v42 }
 0x2ef   : > { %v569_v45 = vadd.f32 %v714_v43, %v562_v44 }
 0x2f1   : > { %v570_v46 = vpack.c.bf16 %v569_v45, %v569_v45 }
 0x2f3   : > { %572 = vst.msk [vmem:[%s364_s13] sm:$0xf] %vm571_vm3, %v570_v46 }
 0x2f4 PF: > { %s17_s26 = sadd.s32 1, %s803_s26   ;;  %s930_s24 = smov %s799_s25 }
 0x2f5   : > { %p14_p5 = scmp.ge.s32.totalorder %s17_s26, 4   ;;  %s931_s25 = smov %s933_s27 }
 0x2f7   :  { %16 = sbr.rel (!%p14_p5) target bundleno = 2 (0x2), region = 95 }

// kernel: transformer_forward.6
= control target key start
LH: loop header
LB: loop body
LE: loop exit
PB: predicated region body
PF: predicated region fallthrough
CT: control target
= control target key end

     0   :  { %s2606_s21 = smov 0   ;;  %s2608_s22 = smov 0   ;;  %s2960_s0 = inlined_call_operand.vmem [shape: bf16[2,8,32], index: 0, kind: input, shape index: {}, may-alias: {0,1}]   ;;  %s2961_s1 = inlined_call_operand.vmem [shape: bf16[2,8,32], index: 1, kind: input, shape index: {}, may-alias: {0,1}]   ;;  %s2962_s2 = inlined_call_operand.vmem [shape: bf16[4,32,8], index: 2, kind: input, shape index: {}]   ;;  %s2963_s3 = inlined_call_operand.vmem [shape: f32[4,1,8], index: 3, kind: input, shape index: {}]   ;;  %s2964_s4 = inlined_call_operand.vmem [shape: bf16[4,32,8], index: 4, kind: input, shape index: {}]   ;;  %s2965_s5 = inlined_call_operand.vmem [shape: f32[4,1,8], index: 5, kind: input, shape index: {}]   ;;  %s2966_s6 = inlined_call_operand.vmem [shape: bf16[4,32,8], index: 6, kind: input, shape index: {}]   ;;  %s2967_s7 = inlined_call_operand.vmem [shape: f32[4,1,8], index: 7, kind: input, shape index: {}]   ;;  %s2968_s8 = inlined_call_operand.vmem [shape: bf16[32,32], index: 8, kind: input, shape index: {}]   ;;  %s2969_s9 = inlined_call_operand.vmem [shape: f32[1,32], index: 9, kind: input, shape index: {}]   ;;  %s2970_s10 = inlined_call_operand.vmem [shape: f32[1,32], index: 10, kind: input, shape index: {}]   ;;  %s2971_s11 = inlined_call_operand.vmem [shape: f32[1,32], index: 11, kind: input, shape index: {}]   ;;  %s2972_s12 = inlined_call_operand.vmem [shape: bf16[2,8,32], index: 12, kind: output, shape index: {}]  }
   0x1   :  { %s2610_s23 = smov 0  }
   0x2 LB: > { %s41_s24 = sadd.s32 1, %s2528_s22  ;;  %p2099_p0 = scmp.ge.s32.totalorder %s2532_s23, 1  ;;  %s2532_s23 = sphi %s2610_s23, %s22_s23   ;;  %s2528_s22 = sphi %s2608_s22, %s2974_s22   ;;  %s2524_s21 = sphi %s2606_s21, %s2973_s21  }
   0x3   : > { %p43_p1 = scmp.ge.s32.totalorder %s41_s24, 2  ;;  %p401_p2 = scmp.lt.s32.totalorder %s2532_s23, 3 }
   0x5   : > { %s2976_s24 = smov (%p43_p1, %s41_s24), 0  ;;  %p402_p3 = pnand %p2099_p0, %p401_p2 }
   0x6   : > { %p454_p4 = scmp.lt.s32.totalorder (!%p402_p3), %s2524_s21, 1  ;;  %s2539_s30 = smov (!%p402_p3), 16  }
   0x7   : > { %405 = sbr.rel (%p402_p3) target bundleno = 1672 (0x688), region = 68  ;;  %s2540_s13 = smov (!%p402_p3), 24  }
   0xc   : > { %v2458_v0 = vld [vmem:[%s2962_s2 + $0x8] sm:$0xff]   ;;  %v2534_v1 = vmov 0.0   ;;  %v2459_v2 = vld [vmem:[%s2962_s2] sm:$0xff]   ;;  %vm2535_vm0 = vmmov 0   ;;  %s2978_s21 = smov (!%p454_p4, %s2524_s21), 1  ;;  %vm504_vm1 = vcmask 261120  }
   0xd   : > { %2273 = vmatprep.subr.bf16.mxu0 %v2534_v1  ;;  %2281 = vmatprep.subr.bf16.mxu1 %v2534_v1  ;;  %s2637_s29 = sshll.u32 %s2978_s21, 2  ;;  %v2460_v3 = vld [vmem:[%s2962_s2 + $0x28] sm:$0xff]   ;;  %v2466_v5 = vld [vmem:[%s2962_s2 + $0x18] sm:$0xff]   ;;  %v2461_v6 = vld [vmem:[%s2962_s2 + $0x20] sm:$0xff]   ;;  %vm764_vm2 = vcmask 64512   ;;  %vm549_vm3 = vcmask 60416  }
   0xe   : > { %2274 = vmatpush3.bf16.msra.mxu0 %v2458_v0  ;;  %2277 = vmatprep.mubr.msk.bf16.mxu0 %vm2535_vm0, %v2534_v1  ;;  %s2646_s16 = scalar_lea.vmem %s2960_s0, %s2637_s29  ;;  %v2468_v7 = vld [vmem:[%s2962_s2 + $0x10] sm:$0xff]   ;;  %v2462_v8 = vld [vmem:[%s2964_s4 + $0x8] sm:$0xff]   ;;  %v2471_v9 = vld [vmem:[%s2962_s2 + $0x38] sm:$0xff]   ;;  %s467_s15 = scalar_lea.vmem %s2961_s1, %s2637_s29  ;;  %765 = vst.msk [vmem:[#allocation7] sm:$0xff] %vm764_vm2, %v2534_v1  ;;  %vm1638_vm4 = vcmask 1043456   ;;  %vm755_vm5 = vcmask 7168  }
   0xf   : > { %2275 = vmatprep.subr.bf16.mxu0 %v2534_v1  ;;  %2285 = vmatprep.mubr.msk.bf16.mxu1 %vm2535_vm0, %v2534_v1  ;;  %v480_v4 = vld [vmem:[%s2646_s16] sm:$0xf]  ;;  %v2473_v11 = vld [vmem:[%s2962_s2 + $0x30] sm:$0xff]   ;;  %v2464_v13 = vld [vmem:[%s2964_s4 + $0x18] sm:$0xff]   ;;  %766 = vst.msk [vmem:[#allocation7 + $0x8] sm:$0xff] %vm764_vm2, %v2534_v1  ;;  %s2538_s21 = smov 8   ;;  %s474_s25 = scalar_lea.vmem %s2972_s12, %s2637_s29 }
  0x10   : > { %2282 = vmatpush3.bf16.msra.mxu1 %v2466_v5  ;;  %v2463_v10 = vld [vmem:[%s2964_s4] sm:$0xff]   ;;  %v2465_v14 = vld [vmem:[%s2964_s4 + $0x10] sm:$0xff]   ;;  %v2467_v15 = vld [vmem:[%s2964_s4 + $0x28] sm:$0xff]   ;;  %767 = vst.msk [vmem:[#allocation7 + $0x10] sm:$0xff] %vm764_vm2, %v2534_v1  ;;  %vm1880_vm6 = vcmask 126016   ;;  %vm1889_vm7 = vcmask 191616  }
  0x11   : > { %2283 = vmatprep.subr.bf16.mxu1 %v2534_v1  ;;  %v2687_v12 = vld [vmem:[%s467_s15] sm:$0xf]  ;;  %v2470_v17 = vld [vmem:[%s2964_s4 + $0x38] sm:$0xff]   ;;  %v2472_v18 = vld [vmem:[%s2964_s4 + $0x30] sm:$0xff]   ;;  %768 = vst.msk [vmem:[#allocation7 + $0x18] sm:$0xff] %vm764_vm2, %v2534_v1  ;;  %vm1898_vm8 = vcmask 257216  }
  0x12   : > { %2276 = vmatpush3.bf16.msra.mxu0 %v2459_v2  ;;  %v2469_v16 = vld [vmem:[%s2964_s4 + $0x20] sm:$0xff]   ;;  %v2474_v19 = vld [vmem:[%s2966_s6 + $0x8] sm:$0xff]   ;;  %v2476_v21 = vld [vmem:[%s2966_s6 + $0x18] sm:$0xff]   ;;  %760 = vst.msk [vmem:[#allocation6] sm:$0xff] %vm755_vm5, %v2534_v1  ;;  %vm2001_vm9 = vcmask 257024  }
  0x13   : > { %2289 = vmatprep.subr.bf16.mxu0 %v2534_v1  ;;  %v2475_v20 = vld [vmem:[%s2966_s6] sm:$0xff]   ;;  %v2477_v22 = vld [vmem:[%s2966_s6 + $0x10] sm:$0xff]   ;;  %v2478_v23 = vld [vmem:[%s2966_s6 + $0x28] sm:$0xff]   ;;  %761 = vst.msk [vmem:[#allocation6 + $0x8] sm:$0xff] %vm755_vm5, %v2534_v1 }
  0x14   : > { %2284 = vmatpush3.bf16.msra.mxu1 %v2468_v7  ;;  %v2479_v24 = vld [vmem:[%s2966_s6 + $0x20] sm:$0xff]   ;;  %v2480_v25 = vld [vmem:[%s2966_s6 + $0x38] sm:$0xff]   ;;  %v2481_v26 = vld [vmem:[%s2966_s6 + $0x30] sm:$0xff]   ;;  %762 = vst.msk [vmem:[#allocation6 + $0x10] sm:$0xff] %vm755_vm5, %v2534_v1 }
  0x15   : > { %2278 = vmatmul.mubr.msk.bf16.vlgmr.msra.gmra.mxu0 %vm504_vm1, %v480_v4  ;;  %2297 = vmatprep.subr.bf16.mxu1 %v2534_v1  ;;  %v2103_v27 = vld [vmem:[%s2963_s3] ss:$0 sm:$0xff]  ;;  %v2121_v34 = vld [vmem:[%s2963_s3 + $0x2] ss:$0 sm:$0xff]  ;;  %v2112_v36 = vld [vmem:[%s2963_s3 + $0x1] ss:$0 sm:$0xff] }
  0x16   : > { %2290 = vmatpush3.bf16.msra.mxu0 %v2460_v3  ;;  %2293 = vmatprep.mubr.msk.bf16.mxu0 %vm2535_vm0, %v2534_v1  ;;  %v2134_v46 = vld [vmem:[%s2965_s5] ss:$0 sm:$0xff]  ;;  %v2130_v50 = vld [vmem:[%s2963_s3 + $0x3] ss:$0 sm:$0xff]  ;;  %v2147_v60 = vld [vmem:[%s2965_s5 + $0x1] ss:$0 sm:$0xff] }
  0x17   : > { %2291 = vmatprep.subr.bf16.mxu0 %v2534_v1  ;;  %2286 = vmatmul.mubr.msk.bf16.vlgmr.msra.gmra.mxu1 %vm504_vm1, %v480_v4  ;;  %763 = vst.msk [vmem:[#allocation6 + $0x18] sm:$0xff] %vm755_vm5, %v2534_v1 }
  0x18   : > { %2298 = vmatpush3.bf16.msra.mxu1 %v2471_v9  ;;  %2301 = vmatprep.mubr.msk.bf16.mxu1 %vm2535_vm0, %v2534_v1 }
  0x19   : > { %2299 = vmatprep.subr.bf16.mxu1 %v2534_v1 }
  0x1a   : > { %2292 = vmatpush3.bf16.msra.mxu0 %v2461_v6 }
  0x1b   : > { %2305 = vmatprep.subr.bf16.mxu0 %v2534_v1 }
  0x1c   : > { %2300 = vmatpush3.bf16.msra.mxu1 %v2473_v11 }
  0x1d   : > { %2294 = vmatmul.mubr.msk.bf16.vlgmr.msra.gmra.mxu0 %vm504_vm1, %v480_v4  ;;  %2313 = vmatprep.subr.bf16.mxu1 %v2534_v1 }
  0x1e   : > { %2306 = vmatpush3.bf16.msra.mxu0 %v2462_v8  ;;  %2309 = vmatprep.mubr.msk.bf16.mxu0 %vm2535_vm0, %v2534_v1  ;;  %v2165_v8 = vld [vmem:[%s2965_s5 + $0x2] ss:$0 sm:$0xff] }
  0x1f   : > { %2307 = vmatprep.subr.bf16.mxu0 %v2534_v1  ;;  %2302 = vmatmul.mubr.msk.bf16.vlgmr.msra.gmra.mxu1 %vm504_vm1, %v480_v4 }
  0x20   : > { %2317 = vmatprep.mubr.msk.bf16.mxu1 %vm2535_vm0, %v2534_v1  ;;  %2314 = vmatpush3.bf16.msra.mxu1 %v2474_v19 }
  0x21   : > { %2315 = vmatprep.subr.bf16.mxu1 %v2534_v1 }
  0x22   : > { %2308 = vmatpush3.bf16.msra.mxu0 %v2463_v10 }
  0x23   : > { %2321 = vmatprep.subr.bf16.mxu0 %v2534_v1 }
  0x24   : > { %2316 = vmatpush3.bf16.msra.mxu1 %v2475_v20 }
  0x25   : > { %2310 = vmatmul.mubr.msk.bf16.vlgmr.msra.gmra.mxu0 %vm504_vm1, %v2687_v12  ;;  %2329 = vmatprep.subr.bf16.mxu1 %v2534_v1 }
  0x26   : > { %2322 = vmatpush3.bf16.msra.mxu0 %v2464_v13  ;;  %2325 = vmatprep.mubr.msk.bf16.mxu0 %vm2535_vm0, %v2534_v1 }
  0x27   : > { %2323 = vmatprep.subr.bf16.mxu0 %v2534_v1  ;;  %2318 = vmatmul.mubr.msk.bf16.vlgmr.msra.gmra.mxu1 %vm504_vm1, %v2687_v12 }
  0x28   : > { %2330 = vmatpush3.bf16.msra.mxu1 %v2476_v21  ;;  %2333 = vmatprep.mubr.msk.bf16.mxu1 %vm2535_vm0, %v2534_v1 }
  0x29   : > { %2331 = vmatprep.subr.bf16.mxu1 %v2534_v1 }
  0x2a   : > { %2324 = vmatpush3.bf16.msra.mxu0 %v2465_v14 }
  0x2b   : > { %2337 = vmatprep.subr.bf16.mxu0 %v2534_v1 }
  0x2c   : > { %2332 = vmatpush3.bf16.msra.mxu1 %v2477_v22 }
  0x2d   : > { %2326 = vmatmul.mubr.msk.bf16.vlgmr.msra.gmra.mxu0 %vm504_vm1, %v2687_v12  ;;  %2345 = vmatprep.subr.bf16.mxu1 %v2534_v1 }
  0x2e   : > { %2338 = vmatpush3.bf16.msra.mxu0 %v2467_v15  ;;  %2341 = vmatprep.mubr.msk.bf16.mxu0 %vm2535_vm0, %v2534_v1 }
  0x2f   : > { %2339 = vmatprep.subr.bf16.mxu0 %v2534_v1  ;;  %2334 = vmatmul.mubr.msk.bf16.vlgmr.msra.gmra.mxu1 %vm504_vm1, %v2687_v12 }
  0x30   : > { %2346 = vmatpush3.bf16.msra.mxu1 %v2478_v23  ;;  %2349 = vmatprep.mubr.msk.bf16.mxu1 %vm2535_vm0, %v2534_v1 }
  0x31   : > { %2347 = vmatprep.subr.bf16.mxu1 %v2534_v1 }
  0x32   : > { %2340 = vmatpush3.bf16.msra.mxu0 %v2469_v16 }
  0x33   : > { %2353 = vmatprep.subr.bf16.mxu0 %v2534_v1 }
  0x34   : > { %2348 = vmatpush3.bf16.msra.mxu1 %v2479_v24 }
  0x35   : > { %2342 = vmatmul.mubr.msk.bf16.vlgmr.msra.gmra.mxu0 %vm504_vm1, %v2687_v12  ;;  %2361 = vmatprep.subr.bf16.mxu1 %v2534_v1 }
  0x36   : > { %2354 = vmatpush3.bf16.msra.mxu0 %v2470_v17  ;;  %2357 = vmatprep.mubr.msk.bf16.mxu0 %vm2535_vm0, %v2534_v1 }
  0x37   : > { %2355 = vmatprep.subr.bf16.mxu0 %v2534_v1  ;;  %2350 = vmatmul.mubr.msk.bf16.vlgmr.msra.gmra.mxu1 %vm504_vm1, %v2687_v12 }
  0x38   : > { %2362 = vmatpush3.bf16.msra.mxu1 %v2480_v25  ;;  %2365 = vmatprep.mubr.msk.bf16.mxu1 %vm2535_vm0, %v2534_v1 }
  0x39   : > { %2363 = vmatprep.subr.bf16.mxu1 %v2534_v1 }
  0x3a   : > { %2356 = vmatpush3.bf16.msra.mxu0 %v2472_v18  ;;  %v2183_v18 = vld [vmem:[%s2965_s5 + $0x3] ss:$0 sm:$0xff] }
  0x3b   : > { %2369 = vmatprep.subr.bf16.mxu0 %v2534_v1 }
  0x3c   : > { %2364 = vmatpush3.bf16.msra.mxu1 %v2481_v26 }
  0x3d   : > { %2358 = vmatmul.mubr.msk.bf16.vlgmr.msra.gmra.mxu0 %vm504_vm1, %v2687_v12  ;;  %2375 = vmatprep.subr.bf16.mxu1 %v2534_v1 }
  0x3e   : > { %2371 = vmatprep.mubr.msk.bf16.mxu0 %vm2535_vm0, %v2534_v1 }
  0x3f   : > { %2366 = vmatmul.mubr.msk.bf16.vlgmr.msra.gmra.mxu1 %vm504_vm1, %v2687_v12 }
  0x40   : > { %2377 = vmatprep.mubr.msk.bf16.mxu1 %vm2535_vm0, %v2534_v1 }
  0xd5   : > { %v542_v28 = vpop.f32.mrf.mxu0 }
  0xd6   : > { %v543_v29 = vadd.f32 %v2103_v27, %v542_v28 }
  0xd7   : > { %v2279_v30 = vpop.f32.mrf.mxu0  ;;  %v610_v39 = vpop.f32.mrf.mxu1 }
  0xd8   : > { %v548_v31 = vpack.c.bf16 %v543_v29, %v543_v29  ;;  %v611_v41 = vadd.f32 %v2112_v36, %v610_v39  ;;  %v2156_v39 = vld [vmem:[%s2967_s7 + $0x1] ss:$0 sm:$0xff] }
  0xd9   : > { %v545_v32 = vpop.f32.mrf.mxu0  ;;  %v2287_v43 = vpop.f32.mrf.mxu1 }
  0xda   : > { %550 = vst.msk [vmem:[#allocation2] sm:$0xf] %vm549_vm3, %v548_v31  ;;  %v616_v44 = vpack.c.bf16 %v611_v41, %v611_v41  ;;  %v2138_v32 = vld [vmem:[%s2967_s7] ss:$0 sm:$0xff] }
  0xdb   : > { %v2280_v33 = vpop.f32.mrf.mxu0  ;;  %v613_v47 = vpop.f32.mrf.mxu1 }
  0xdc   : > { %618 = vst.msk [vmem:[#allocation2 + $0x4] sm:$0xf] %vm549_vm3, %v616_v44 }
  0xdd   : > { %v678_v35 = vpop.f32.mrf.mxu0  ;;  %v2288_v49 = vpop.f32.mrf.mxu1 }
  0xde   : > { %v679_v37 = vadd.f32 %v2121_v34, %v678_v35 }
  0xdf   : > { %v2295_v38 = vpop.f32.mrf.mxu0  ;;  %v746_v53 = vpop.f32.mrf.mxu1 }
  0xe0   : > { %v684_v40 = vpack.c.bf16 %v679_v37, %v679_v37  ;;  %v747_v55 = vadd.f32 %v2130_v50, %v746_v53 }
  0xe1   : > { %v681_v42 = vpop.f32.mrf.mxu0  ;;  %v2303_v57 = vpop.f32.mrf.mxu1  ;;  %v1313_v14 = vld [vmem:[#allocation2] sm:$0xf] }
  0xe2   : > { %686 = vst.msk [vmem:[#allocation2 + $0x8] sm:$0xf] %vm549_vm3, %v684_v40  ;;  %v752_v58 = vpack.c.bf16 %v747_v55, %v747_v55  ;;  %v2192_v55 = vld [vmem:[%s2967_s7 + $0x3] ss:$0 sm:$0xff] }
  0xe3   : > { %v2296_v45 = vpop.f32.mrf.mxu0  ;;  %v749_v61 = vpop.f32.mrf.mxu1  ;;  %v1314_v22 = vld [vmem:[#allocation2 + $0x4] sm:$0xf] }
  0xe4   : > { %754 = vst.msk [vmem:[#allocation2 + $0xc] sm:$0xf] %vm549_vm3, %v752_v58 }
  0xe5   : > { %v831_v48 = vpop.f32.mrf.mxu0  ;;  %v2304_v63 = vpop.f32.mrf.mxu1 }
  0xe6   : > { %v832_v51 = vadd.f32 %v2134_v46, %v831_v48  ;;  %v2174_v48 = vld [vmem:[%s2967_s7 + $0x2] ss:$0 sm:$0xff] }
  0xe7   : > { %v2311_v52 = vpop.f32.mrf.mxu0  ;;  %v894_v33 = vpop.f32.mrf.mxu1 }
  0xe8   : > { %v900_v54 = vpack.c.bf16 %v832_v51, %v832_v51  ;;  %v895_v34 = vadd.f32 %v2138_v32, %v894_v33 }
  0xe9   : > { %v834_v56 = vpop.f32.mrf.mxu0  ;;  %v1315_v28 = vld [vmem:[#allocation2 + $0x8] sm:$0xf]  ;;  %v2319_v35 = vpop.f32.mrf.mxu1 }
  0xea   : > { %902 = vst.msk [vmem:[#allocation3] sm:$0xf] %vm549_vm3, %v900_v54  ;;  %v903_v36 = vpack.c.bf16 %v895_v34, %v895_v34 }
  0xeb   : > { %v2312_v59 = vpop.f32.mrf.mxu0  ;;  %v1316_v31 = vld [vmem:[#allocation2 + $0xc] sm:$0xf]  ;;  %v897_v37 = vpop.f32.mrf.mxu1 }
  0xec   : > { %904 = vst.msk [vmem:[#allocation4] sm:$0xf] %vm549_vm3, %v903_v36 }
  0xed   : > { %v964_v62 = vpop.f32.mrf.mxu0  ;;  %v2320_v38 = vpop.f32.mrf.mxu1 }
  0xee   : > { %v965_v0 = vadd.f32 %v2147_v60, %v964_v62 }
  0xef   : > { %v2327_v2 = vpop.f32.mrf.mxu0  ;;  %v1029_v40 = vpop.f32.mrf.mxu1 }
  0xf0   : > { %v1035_v3 = vpack.c.bf16 %v965_v0, %v965_v0  ;;  %v1030_v41 = vadd.f32 %v2156_v39, %v1029_v40  ;;  %v2536_v0 = vmov -1e+30  }
  0xf1   : > { %v967_v4 = vpop.f32.mrf.mxu0  ;;  %v1317_v5 = vld [vmem:[#allocation3] sm:$0xf]  ;;  %v2335_v42 = vpop.f32.mrf.mxu1  ;;  %756 = vst.msk [vmem:[#allocation5] sm:$0xff] %vm755_vm5, %v2536_v0  ;;  %757 = vst.msk [vmem:[#allocation5 + $0x8] sm:$0xff] %vm755_vm5, %v2536_v0 }
  0xf2   : > { %1037 = vst.msk [vmem:[#allocation3 + $0x4] sm:$0xf] %vm549_vm3, %v1035_v3  ;;  %v1326_v6 = vsel %vm764_vm2, %v1317_v5, 0  ;;  %v1038_v43 = vpack.c.bf16 %v1030_v41, %v1030_v41 }
  0xf3   : > { %v2328_v7 = vpop.f32.mrf.mxu0  ;;  %2370 = vmatpush3.bf16.xpose.msra.mxu0 %v1326_v6  ;;  %v1032_v44 = vpop.f32.mrf.mxu1  ;;  %v1631_v45 = vld [vmem:[#allocation4] sm:$0xf]  ;;  %758 = vst.msk [vmem:[#allocation5 + $0x10] sm:$0xff] %vm755_vm5, %v2536_v0  ;;  %759 = vst.msk [vmem:[#allocation5 + $0x18] sm:$0xff] %vm755_vm5, %v2536_v0 }
  0xf4   : > { %2381 = vmatprep.subr.bf16.mxu0 %v2534_v1  ;;  %1040 = vst.msk [vmem:[#allocation4 + $0x4] sm:$0xf] %vm549_vm3, %v1038_v43  ;;  %v1640_v46 = vsel %vm1638_vm4, %v1631_v45, 0 }
  0xf5   : > { %v1100_v9 = vpop.f32.mrf.mxu0  ;;  %v2336_v47 = vpop.f32.mrf.mxu1 }
  0xf6   : > { %v1101_v10 = vadd.f32 %v2165_v8, %v1100_v9 }
  0xf7   : > { %v2343_v11 = vpop.f32.mrf.mxu0  ;;  %v1165_v49 = vpop.f32.mrf.mxu1 }
  0xf8   : > { %v1171_v12 = vpack.c.bf16 %v1101_v10, %v1101_v10  ;;  %v1166_v50 = vadd.f32 %v2174_v48, %v1165_v49  ;;  %v2537_v11 = vmov 0  }
  0xf9   : > { %v1103_v13 = vpop.f32.mrf.mxu0  ;;  %v1318_v15 = vld [vmem:[#allocation3 + $0x4] sm:$0xf]  ;;  %v2351_v51 = vpop.f32.mrf.mxu1  ;;  %2456 = vset.pattern.permute.xlu0 %v2537_v11  ;;  %2457 = vset.pattern.permute.xlu1 %v2537_v11 }
  0xfa   : > { %1173 = vst.msk [vmem:[#allocation3 + $0x8] sm:$0xf] %vm549_vm3, %v1171_v12  ;;  %2372 = vmatmul.mubr.msk.bf16.vlgmr.msra.gmra.mxu0 %vm764_vm2, %v1313_v14  ;;  %v1372_v16 = vsel %vm764_vm2, %v1318_v15, 0  ;;  %v1174_v52 = vpack.c.bf16 %v1166_v50, %v1166_v50  ;;  %v1509_v35 = vld [vmem:[#allocation5 + $0x18] sm:$0xff] }
  0xfb   : > { %v2344_v17 = vpop.f32.mrf.mxu0  ;;  %2376 = vmatpush3.bf16.xpose.msra.mxu1 %v1372_v16  ;;  %2383 = vmatprep.mubr.msk.bf16.mxu0 %vm2535_vm0, %v2534_v1  ;;  %v1168_v53 = vpop.f32.mrf.mxu1  ;;  %v1632_v61 = vld [vmem:[#allocation4 + $0x4] sm:$0xf] }
  0xfc   : > { %2387 = vmatprep.subr.bf16.mxu1 %v2534_v1  ;;  %1176 = vst.msk [vmem:[#allocation4 + $0x8] sm:$0xf] %vm549_vm3, %v1174_v52  ;;  %v1686_v62 = vsel %vm1638_vm4, %v1632_v61, 0 }
  0xfd   : > { %v1236_v19 = vpop.f32.mrf.mxu0  ;;  %v2352_v54 = vpop.f32.mrf.mxu1 }
  0xfe   : > { %v1237_v20 = vadd.f32 %v2183_v18, %v1236_v19 }
  0xff   : > { %v2359_v21 = vpop.f32.mrf.mxu0  ;;  %v1301_v56 = vpop.f32.mrf.mxu1 }
 0x100   : > { %v1307_v23 = vpack.c.bf16 %v1237_v20, %v1237_v20  ;;  %v1302_v57 = vadd.f32 %v2192_v55, %v1301_v56 }
 0x101   : > { %v1239_v24 = vpop.f32.mrf.mxu0  ;;  %v1319_v25 = vld [vmem:[#allocation3 + $0x8] sm:$0xf]  ;;  %v2367_v58 = vpop.f32.mrf.mxu1 }
 0x102   : > { %1309 = vst.msk [vmem:[#allocation3 + $0xc] sm:$0xf] %vm549_vm3, %v1307_v23  ;;  %2378 = vmatmul.mubr.msk.bf16.vlgmr.msra.gmra.mxu1 %vm764_vm2, %v1314_v22  ;;  %v1418_v26 = vsel %vm764_vm2, %v1319_v25, 0  ;;  %v1310_v59 = vpack.c.bf16 %v1302_v57, %v1302_v57  ;;  %v2881_v23 = vld [vmem:[#allocation5] sm:$0xff] }
 0x103   : > { %v2360_v27 = vpop.f32.mrf.mxu0  ;;  %2382 = vmatpush3.bf16.xpose.msra.mxu0 %v1418_v26  ;;  %2389 = vmatprep.mubr.msk.bf16.mxu1 %vm2535_vm0, %v2534_v1  ;;  %v1304_v60 = vpop.f32.mrf.mxu1  ;;  %v1633_v48 = vld [vmem:[#allocation4 + $0x8] sm:$0xf] }
 0x104   : > { %2393 = vmatprep.subr.bf16.mxu0 %v2534_v1  ;;  %1312 = vst.msk [vmem:[#allocation4 + $0xc] sm:$0xf] %vm549_vm3, %v1310_v59  ;;  %v2891_v27 = vld [vmem:[#allocation5 + $0x8] sm:$0xff]  ;;  %v1732_v51 = vsel %vm1638_vm4, %v1633_v48, 0 }
 0x105   : > { %v2368_v63 = vpop.f32.mrf.mxu1 }
 0x109   : > { %v1320_v29 = vld [vmem:[#allocation3 + $0xc] sm:$0xf] }
 0x10a   : > { %2384 = vmatmul.mubr.msk.bf16.vlgmr.msra.gmra.mxu0 %vm764_vm2, %v1315_v28  ;;  %v1464_v30 = vsel %vm764_vm2, %v1320_v29, 0 }
 0x10b   : > { %2388 = vmatpush3.bf16.xpose.msra.mxu1 %v1464_v30  ;;  %2395 = vmatprep.mubr.msk.bf16.mxu0 %vm2535_vm0, %v2534_v1  ;;  %v1634_v55 = vld [vmem:[#allocation4 + $0xc] sm:$0xf] }
 0x10c   : > { %2399 = vmatprep.subr.bf16.mxu1 %v2534_v1  ;;  %2394 = vmatpush3.bf16.msra.mxu0 %v1640_v46  ;;  %v1778_v59 = vsel %vm1638_vm4, %v1634_v55, 0 }
 0x10d   : > { %2405 = vmatprep.subr.bf16.mxu0 %v2534_v1 }
 0x112   : > { %2390 = vmatmul.mubr.msk.bf16.vlgmr.msra.gmra.mxu1 %vm764_vm2, %v1316_v31  ;;  %v1508_v31 = vld [vmem:[#allocation5 + $0x10] sm:$0xff] }
 0x113   : > { %2401 = vmatprep.mubr.msk.bf16.mxu1 %vm2535_vm0, %v2534_v1  ;;  %2400 = vmatpush3.bf16.msra.mxu1 %v1686_v62 }
 0x114   : > { %2411 = vmatprep.subr.bf16.mxu1 %v2534_v1 }
 0x1ba   : > { %v1362_v2 = vpop.f32.mrf.mxu0 }
 0x1bb   : > { %v1510_v3 = vsel %vm764_vm2, %v1362_v2, -inf }
 0x1bc   : > { %1511 = vmax.xlane.f32.xlu0 %v1510_v3  ;;  %v2373_v4 = vpop.f32.mrf.mxu0 }
 0x1be   : > { %v1365_v5 = vpop.f32.mrf.mxu0 }
 0x1c0   : > { %v2374_v6 = vpop.f32.mrf.mxu0 }
 0x1c2   : > { %v1408_v7 = vpop.f32.mrf.mxu1 }
 0x1c3   : > { %v1513_v8 = vsel %vm764_vm2, %v1408_v7, -inf }
 0x1c4   : > { %1514 = vmax.xlane.f32.xlu0 %v1513_v8  ;;  %v2379_v9 = vpop.f32.mrf.mxu1 }
 0x1c6   : > { %v1411_v10 = vpop.f32.mrf.mxu1 }
 0x1c7   : > { %v1571_v10 = vld [vmem:[#allocation6 + $0x8] sm:$0xff] }
 0x1c8   : > { %v2380_v12 = vpop.f32.mrf.mxu1 }
 0x1ca   : > { %v1454_v13 = vpop.f32.mrf.mxu0 }
 0x1cb   : > { %v1516_v14 = vsel %vm764_vm2, %v1454_v13, -inf }
 0x1cc   : > { %1517 = vmax.xlane.f32.xlu1 %v1516_v14  ;;  %v2385_v15 = vpop.f32.mrf.mxu0 }
 0x1cd   : > { %v1572_v15 = vld [vmem:[#allocation6 + $0x10] sm:$0xff] }
 0x1ce   : > { %v1457_v16 = vpop.f32.mrf.mxu0 }
 0x1d0   : > { %v2386_v17 = vpop.f32.mrf.mxu0 }
 0x1d2   : > { %v1500_v18 = vpop.f32.mrf.mxu1 }
 0x1d3   : > { %v1519_v19 = vsel %vm764_vm2, %v1500_v18, -inf }
 0x1d4   : > { %v2391_v20 = vpop.f32.mrf.mxu1  ;;  %1520 = vmax.xlane.f32.xlu1 %v1519_v19 }
 0x1d5   : > { %v1573_v20 = vld [vmem:[#allocation6 + $0x18] sm:$0xff] }
 0x1d6   : > { %v1503_v21 = vpop.f32.mrf.mxu1 }
 0x1d8   : > { %v2392_v22 = vpop.f32.mrf.mxu1 }
 0x245   : > { %v1512_v24 = vpop.xlane.xlu0 %1511 }
 0x246   : > { %v2884_v25 = vmax.f32 %v2881_v23, %v1512_v24 }
 0x248   : > { %v1526_v26 = vsub.f32 %v2881_v23, %v2884_v25  ;;  %1828 = vst.msk [vmem:[#allocation5] sm:$0xff] %vm755_vm5, %v2884_v25  ;;  %1540 = vperm.xlu0 %2456, %v2884_v25   ;;  %v1570_v23 = vld [vmem:[#allocation6] sm:$0xff] }
 0x24a   : > { %v1530_v11 = vmul.f32 1.442695, %v1526_v26 }
 0x24d   : > { %v1515_v28 = vpop.xlane.xlu0 %1514 }
 0x24e   : > { %v1523_v29 = vmax.f32 %v2891_v27, %v1515_v28 }
 0x250   : > { %v1527_v30 = vsub.f32 %v2891_v27, %v1523_v29  ;;  %1829 = vst.msk [vmem:[#allocation5 + $0x8] sm:$0xff] %vm755_vm5, %v1523_v29  ;;  %1545 = vperm.xlu1 %2457, %v1523_v29  }
 0x252   : > { %v1532_v4 = vmul.f32 1.442695, %v1527_v30 }
 0x255   : > { %v1518_v32 = vpop.xlane.xlu1 %1517 }
 0x256   : > { %v1524_v33 = vmax.f32 %v1508_v31, %v1518_v32 }
 0x258   : > { %v1528_v34 = vsub.f32 %v1508_v31, %v1524_v33  ;;  %1830 = vst.msk [vmem:[#allocation5 + $0x10] sm:$0xff] %vm755_vm5, %v1524_v33  ;;  %1550 = vperm.xlu1 %2457, %v1524_v33  }
 0x25a   : > { %v1534_v63 = vmul.f32 1.442695, %v1528_v34 }
 0x25d   : > { %v1521_v36 = vpop.xlane.xlu1 %1520 }
 0x25e   : > { %v1525_v37 = vmax.f32 %v1509_v35, %v1521_v36 }
 0x260   : > { %v1529_v38 = vsub.f32 %v1509_v35, %v1525_v37  ;;  %1831 = vst.msk [vmem:[#allocation5 + $0x18] sm:$0xff] %vm755_vm5, %v1525_v37  ;;  %1555 = vperm.xlu1 %2457, %v1525_v37  }
 0x262   : > { %v1536_v6 = vmul.f32 1.442695, %v1529_v38  ;;  %v1600_v38 = vld [vmem:[#allocation7 + $0x8] sm:$0xff] }
 0x2c3   : > { %v1541_v39 = vpop.permute.xlu0 %1540 }
 0x2c4   : > { %v1558_v40 = vsub.f32 %v1362_v2, %v1541_v39 }
 0x2c6   : > { %v1562_v41 = vmul.f32 1.442695, %v1558_v40 }
 0x2c8   : > { %2484 = vpow2.f32 %v1562_v41 }
 0x2cb   : > { %v1546_v42 = vpop.permute.xlu1 %1545 }
 0x2cc   : > { %v1559_v43 = vsub.f32 %v1408_v7, %v1546_v42 }
 0x2ce   : > { %v1564_v44 = vmul.f32 1.442695, %v1559_v43 }
 0x2d0   : > { %2486 = vpow2.f32 %v1564_v44 }
 0x2d3   : > { %v1551_v45 = vpop.permute.xlu1 %1550 }
 0x2d4   : > { %v1560_v46 = vsub.f32 %v1454_v13, %v1551_v45 }
 0x2d5   : > { %v2485_v47 = vpop.eup %2484 }
 0x2d6   : > { %v1566_v49 = vmul.f32 1.442695, %v1560_v46  ;;  %v1627_v50 = vpack.c.bf16 %v2485_v47, %v2485_v47  ;;  %v1578_v5 = vsel %vm764_vm2, %v2485_v47, 0.0  ;;  %v1601_v46 = vld [vmem:[#allocation7 + $0x10] sm:$0xff] }
 0x2d8   : > { %2488 = vpow2.f32 %v1566_v49  ;;  %2396 = vmatmul.mubr.msk.bf16.vlgmr.msra.gmra.mxu0 %vm764_vm2, %v1627_v50 }
 0x2d9   : > { %2406 = vmatpush3.bf16.msra.mxu0 %v1732_v51  ;;  %2407 = vmatprep.mubr.msk.bf16.mxu0 %vm2535_vm0, %v2534_v1 }
 0x2da   : > { %2417 = vmatprep.subr.bf16.mxu0 %v2534_v1 }
 0x2db   : > { %v1556_v52 = vpop.permute.xlu1 %1555 }
 0x2dc   : > { %v1561_v53 = vsub.f32 %v1500_v18, %v1556_v52 }
 0x2dd   : > { %v2487_v54 = vpop.eup %2486 }
 0x2de   : > { %v1568_v56 = vmul.f32 1.442695, %v1561_v53  ;;  %v1581_v57 = vsel %vm764_vm2, %v2487_v54, 0.0  ;;  %v1628_v58 = vpack.c.bf16 %v2487_v54, %v2487_v54  ;;  %v1602_v54 = vld [vmem:[#allocation7 + $0x18] sm:$0xff] }
 0x2df   : > { %1582 = vadd.xlane.f32.xlu1 %v1581_v57 }
 0x2e0   : > { %2490 = vpow2.f32 %v1568_v56  ;;  %2402 = vmatmul.mubr.msk.bf16.vlgmr.msra.gmra.mxu1 %vm764_vm2, %v1628_v58 }
 0x2e1   : > { %2412 = vmatpush3.bf16.msra.mxu1 %v1778_v59  ;;  %2413 = vmatprep.mubr.msk.bf16.mxu1 %vm2535_vm0, %v2534_v1  ;;  %2492 = vpow2.f32 %v1534_v63 }
 0x2e2   : > { %2494 = vpow2.f32 %v1532_v4 }
 0x2e3   : > { %2496 = vpow2.f32 %v1536_v6 }
 0x2e4   : > { %2498 = vpow2.f32 %v1530_v11 }
 0x2e5   : > { %v2489_v60 = vpop.eup %2488 }
 0x2e6   : > { %v1584_v61 = vsel %vm764_vm2, %v2489_v60, 0.0  ;;  %v1629_v62 = vpack.c.bf16 %v2489_v60, %v2489_v60 }
 0x2e7   : > { %1585 = vadd.xlane.f32.xlu0 %v1584_v61 }
 0x2e8   : > { %2408 = vmatmul.mubr.msk.bf16.vlgmr.msra.gmra.mxu0 %vm764_vm2, %v1629_v62 }
 0x2e9   : > { %2421 = vmatprep.mubr.msk.bf16.mxu0 %vm2535_vm0, %v2534_v1 }
 0x2ed   : > { %v2491_v0 = vpop.eup %2490 }
 0x2ee   : > { %v1587_v2 = vsel %vm764_vm2, %v2491_v0, 0.0  ;;  %v1630_v3 = vpack.c.bf16 %v2491_v0, %v2491_v0  ;;  %v2493_v7 = vpop.eup %2492 }
 0x2ef   : > { %1588 = vadd.xlane.f32.xlu1 %v1587_v2  ;;  %v2495_v8 = vpop.eup %2494  ;;  %v1576_v16 = vmul.f32 %v2493_v7, %v1572_v15 }
 0x2f0   : > { %2414 = vmatmul.mubr.msk.bf16.vlgmr.msra.gmra.mxu1 %vm764_vm2, %v1630_v3  ;;  %v2497_v9 = vpop.eup %2496  ;;  %v1575_v12 = vmul.f32 %v2495_v8, %v1571_v10  ;;  %v2483_v10 = vld [vmem:[%s2968_s8] sm:$0xff]  }
 0x2f1   : > { %v1577_v21 = vmul.f32 %v2497_v9, %v1573_v20  ;;  %v2499_v22 = vpop.eup %2498 }
 0x2f2   : > { %v1574_v27 = vmul.f32 %v2499_v22, %v1570_v23 }
 0x2f3   : > { %1579 = vadd.xlane.f32.xlu1 %v1578_v5 }
 0x2fd   : > { %1615 = vperm.xlu0 %2456, %v2493_v7   ;;  %v2482_v7 = vld [vmem:[%s2968_s8 + $0x8] sm:$0xff]  }
 0x2fe   : > { %2418 = vmatpush3.bf16.msra.mxu0 %v2482_v7 }
 0x2ff   : > { %2419 = vmatprep.subr.bf16.mxu0 %v2534_v1 }
 0x302   : > { %2420 = vmatpush3.bf16.msra.mxu0 %v2483_v10 }
 0x304   : > { %1610 = vperm.xlu1 %2457, %v2495_v8  }
 0x308   : > { %1620 = vperm.xlu1 %2457, %v2497_v9   ;;  %v1599_v9 = vld [vmem:[#allocation7] sm:$0xff] }
 0x368   : > { %v1583_v13 = vpop.xlane.xlu1 %1582 }
 0x369   : > { %v1591_v14 = vadd.f32 %v1583_v13, %v1575_v12 }
 0x36b   : > { %1596 = vst.msk [vmem:[#allocation6 + $0x8] sm:$0xff] %vm755_vm5, %v1591_v14 }
 0x370   : > { %v1586_v17 = vpop.xlane.xlu0 %1585 }
 0x371   : > { %v1592_v18 = vadd.f32 %v1586_v17, %v1576_v16 }
 0x372   : > { %v1840_v19 = vld [vmem:[#allocation6 + $0x8] sm:$0xff] }
 0x373   : > { %1597 = vst.msk [vmem:[#allocation6 + $0x10] sm:$0xff] %vm755_vm5, %v1592_v18  ;;  %2500 = vrcp.f32 %v1840_v19 }
 0x378   : > { %v1589_v24 = vpop.xlane.xlu1 %1588  ;;  %v1616_v47 = vpop.permute.xlu0 %1615 }
 0x379   : > { %v1593_v25 = vadd.f32 %v1589_v24, %v1577_v21  ;;  %v1625_v50 = vmul.f32 %v1616_v47, %v1601_v46  ;;  %v2212_v47 = vld [vmem:[%s2971_s11] ss:$0 sm:$0xff] }
 0x37a   : > { %v1841_v26 = vld [vmem:[#allocation6 + $0x10] sm:$0xff] }
 0x37b   : > { %1598 = vst.msk [vmem:[#allocation6 + $0x18] sm:$0xff] %vm755_vm5, %v1593_v25  ;;  %2502 = vrcp.f32 %v1841_v26  ;;  %v1967_v26 = vld [vmem:[%s2646_s16] sm:$0xf] }
 0x37c   : > { %v1580_v28 = vpop.xlane.xlu1 %1579 }
 0x37d   : > { %v1590_v29 = vadd.f32 %v1580_v28, %v1574_v27  ;;  %v2207_v27 = vld [vmem:[%s2969_s9] ss:$0 sm:$0xff]  ;;  %v1968_v28 = vunpack.c.l.bf16 %v1967_v26 }
 0x37f   : > { %1595 = vst.msk [vmem:[#allocation6] sm:$0xff] %vm755_vm5, %v1590_v29 }
 0x380   : > { %v2501_v30 = vpop.eup %2500  ;;  %v1611_v39 = vpop.permute.xlu1 %1610 }
 0x381   : > { %1854 = vperm.xlu1 %2457, %v2501_v30   ;;  %v1624_v42 = vmul.f32 %v1611_v39, %v1600_v38 }
 0x382   : > { %v1842_v31 = vld [vmem:[#allocation6 + $0x18] sm:$0xff] }
 0x383   : > { %2504 = vrcp.f32 %v1842_v31 }
 0x384   : > { %v1621_v55 = vpop.permute.xlu1 %1620 }
 0x385   : > { %v1626_v58 = vmul.f32 %v1621_v55, %v1602_v54 }
 0x386   : > { %v1839_v32 = vld [vmem:[#allocation6] sm:$0xff] }
 0x387   : > { %2506 = vrcp.f32 %v1839_v32 }
 0x388   : > { %v2503_v33 = vpop.eup %2502 }
 0x389   : > { %1859 = vperm.xlu1 %2457, %v2503_v33  }
 0x38d   : > { %1605 = vperm.xlu1 %2457, %v2499_v22  }
 0x390   : > { %v2505_v34 = vpop.eup %2504 }
 0x391   : > { %1864 = vperm.xlu0 %2456, %v2505_v34  }
 0x394   : > { %v2507_v35 = vpop.eup %2506 }
 0x395   : > { %1849 = vperm.xlu0 %2456, %v2507_v35  }
 0x398   : > { %v1676_v36 = vpop.f32.mrf.mxu0 }
 0x39a   : > { %v2397_v37 = vpop.f32.mrf.mxu0 }
 0x39c   : > { %v1679_v40 = vpop.f32.mrf.mxu0 }
 0x39e   : > { %v2398_v41 = vpop.f32.mrf.mxu0 }
 0x3a0   : > { %v1722_v43 = vpop.f32.mrf.mxu1 }
 0x3a1   : > { %v1821_v44 = vadd.f32 %v1722_v43, %v1624_v42 }
 0x3a2   : > { %v2403_v45 = vpop.f32.mrf.mxu1 }
 0x3a3   : > { %1825 = vst.msk [vmem:[#allocation7 + $0x8] sm:$0xff] %vm764_vm2, %v1821_v44  ;;  %v2211_v45 = vld [vmem:[%s2970_s10] ss:$0 sm:$0xff] }
 0x3a4   : > { %v1725_v48 = vpop.f32.mrf.mxu1 }
 0x3a6   : > { %v2404_v49 = vpop.f32.mrf.mxu1 }
 0x3a8   : > { %v1768_v51 = vpop.f32.mrf.mxu0 }
 0x3a9   : > { %v1822_v52 = vadd.f32 %v1768_v51, %v1625_v50 }
 0x3aa   : > { %v2409_v53 = vpop.f32.mrf.mxu0  ;;  %v1836_v0 = vld [vmem:[#allocation7 + $0x8] sm:$0xff] }
 0x3ab   : > { %1826 = vst.msk [vmem:[#allocation7 + $0x10] sm:$0xff] %vm764_vm2, %v1822_v52 }
 0x3ac   : > { %v1771_v56 = vpop.f32.mrf.mxu0 }
 0x3ae   : > { %v2410_v57 = vpop.f32.mrf.mxu0 }
 0x3b0   : > { %v1814_v59 = vpop.f32.mrf.mxu1 }
 0x3b1   : > { %v1823_v60 = vadd.f32 %v1814_v59, %v1626_v58 }
 0x3b2   : > { %v2415_v61 = vpop.f32.mrf.mxu1  ;;  %v1837_v6 = vld [vmem:[#allocation7 + $0x10] sm:$0xff] }
 0x3b3   : > { %1827 = vst.msk [vmem:[#allocation7 + $0x18] sm:$0xff] %vm764_vm2, %v1823_v60 }
 0x3b4   : > { %v1817_v62 = vpop.f32.mrf.mxu1 }
 0x3b6   : > { %v2416_v63 = vpop.f32.mrf.mxu1 }
 0x3ba   : > { %v1838_v16 = vld [vmem:[#allocation7 + $0x18] sm:$0xff] }
 0x3fc   : > { %v1855_v2 = vpop.permute.xlu1 %1854 }
 0x3fd   : > { %v1868_v3 = vmul.f32 %v1855_v2, %v1836_v0 }
 0x3ff   : > { %v2215_v4 = vpack.c.bf16 %v1868_v3, %v1868_v3 }
 0x401   : > { %1877 = vrot.lane.b32.xlu1 %v2215_v4, %s2538_s21 }
 0x404   : > { %v1860_v5 = vpop.permute.xlu1 %1859 }
 0x405   : > { %v1869_v8 = vmul.f32 %v1860_v5, %v1837_v6 }
 0x407   : > { %v2216_v11 = vpack.c.bf16 %v1869_v8, %v1869_v8 }
 0x408   : > { %v1606_v12 = vpop.permute.xlu1 %1605 }
 0x409   : > { %v1623_v13 = vmul.f32 %v1606_v12, %v1599_v9  ;;  %1886 = vrot.lane.b32.xlu0 %v2216_v11, %s2539_s30 }
 0x40b   : > { %v1820_v14 = vadd.f32 %v1676_v36, %v1623_v13 }
 0x40c   : > { %v1865_v15 = vpop.permute.xlu0 %1864 }
 0x40d   : > { %1824 = vst.msk [vmem:[#allocation7] sm:$0xff] %vm764_vm2, %v1820_v14  ;;  %v1870_v17 = vmul.f32 %v1865_v15, %v1838_v16 }
 0x40f   : > { %v2217_v18 = vpack.c.bf16 %v1870_v17, %v1870_v17 }
 0x410   : > { %v1850_v19 = vpop.permute.xlu0 %1849 }
 0x411   : > { %1895 = vrot.lane.b32.xlu1 %v2217_v18, %s2540_s13 }
 0x414   : > { %v1835_v20 = vld [vmem:[#allocation7] sm:$0xff] }
 0x415   : > { %v1867_v21 = vmul.f32 %v1850_v19, %v1835_v20 }
 0x417   : > { %v1871_v22 = vpack.c.bf16 %v1867_v21, %v1867_v21 }
 0x419   : > { %1872 = vst.msk [vmem:[#allocation8] sm:$0xf] %vm549_vm3, %v1871_v22 }
 0x473   : > { %v1878_v1 = vpop.permute.xlu1 %1877 }
 0x474   : > { %1881 = vst.msk [vmem:[#allocation8] sm:$0xf] %vm1880_vm6, %v1878_v1 }
 0x47b   : > { %v1887_v24 = vpop.permute.xlu0 %1886 }
 0x47c   : > { %1890 = vst.msk [vmem:[#allocation8] sm:$0xf] %vm1889_vm7, %v1887_v24 }
 0x483   : > { %v1896_v23 = vpop.permute.xlu1 %1895 }
 0x484   : > { %1899 = vst.msk [vmem:[#allocation8] sm:$0xf] %vm1898_vm8, %v1896_v23 }
 0x48b   : > { %v1900_v25 = vld [vmem:[#allocation8] sm:$0xf] }
 0x48c   : > { %2422 = vmatmul.mubr.msk.bf16.vlgmr.msra.gmra.mxu0 %vm504_vm1, %v1900_v25 }
 0x54c   : > { %v1961_v29 = vpop.f32.mrf.mxu0 }
 0x54d   : > { %v1962_v30 = vadd.f32 %v2207_v27, %v1961_v29 }
 0x54e   : > { %v2423_v31 = vpop.f32.mrf.mxu0 }
 0x54f   : > { %v1969_v32 = vadd.f32 %v1968_v28, %v1962_v30 }
 0x550   : > { %v1964_v33 = vpop.f32.mrf.mxu0 }
 0x551   : > { %v1972_v34 = vsel %vm504_vm1, %v1969_v32, 0.0 }
 0x552   : > { %1973 = vadd.xlane.f32.xlu0 %v1972_v34  ;;  %v2424_v35 = vpop.f32.mrf.mxu0 }
 0x5db   : > { %v1974_v36 = vpop.xlane.xlu0 %1973 }
 0x5dc   : > { %v1976_v37 = vmul.f32 0.03125, %v1974_v36 }
 0x5de   : > { %v1977_v38 = vsub.f32 %v1969_v32, %v1976_v37 }
 0x5e0   : > { %v1978_v39 = vmul.f32 %v1977_v38, %v1977_v38 }
 0x5e2   : > { %v1979_v40 = vsel %vm504_vm1, %v1978_v39, 0.0 }
 0x5e3   : > { %1980 = vadd.xlane.f32.xlu1 %v1979_v40 }
 0x66c   : > { %v1981_v41 = vpop.xlane.xlu1 %1980 }
 0x66d   : > { %v1982_v42 = vmul.f32 0.03125, %v1981_v41 }
 0x66f   : > { %v1983_v43 = vadd.f32 1e-05, %v1982_v42 }
 0x671   : > { %2508 = vrsqrt.f32 %v1983_v43 }
 0x67e   : > { %v2509_v44 = vpop.eup %2508 }
 0x67f   : > { %v1985_v46 = vmul.f32 %v2509_v44, %v1977_v38 }
 0x681   : > { %v1992_v48 = vmul.f32 %v2211_v45, %v1985_v46 }
 0x683   : > { %v1999_v49 = vadd.f32 %v2212_v47, %v1992_v48 }
 0x685   : > { %v2000_v50 = vpack.c.bf16 %v1999_v49, %v1999_v49 }
 0x687   : > { %2002 = vst.msk [vmem:[%s474_s25] sm:$0xf] %vm2001_vm9, %v2000_v50 }
 0x688 PF: > { %s22_s23 = sadd.s32 1, %s2532_s23   ;;  %s2973_s21 = smov %s2528_s22 }
 0x689   : > { %p19_p5 = scmp.ge.s32.totalorder %s22_s23, 4   ;;  %s2974_s22 = smov %s2976_s24 }
 0x68b   :  { %21 = sbr.rel (!%p19_p5) target bundleno = 2 (0x2), region = 136 }

</bundles_post_ra>
